<compile_context>
chip_gen: v5e
topology: v5e:2x2
jax: 0.10.0
libtpu: 0.0.40
codegen_flags: <defaults>
</compile_context>

<pallas_src>
import math
import functools

import jax
import jax.numpy as jnp
from jax.experimental import pallas as pl
from jax.experimental.pallas import tpu as pltpu

_ROW_TILE = 512                       # tile over B*S rows (multiple of 8)
_VMEM_LIMIT = 48 * 1024 * 1024        # > default scoped limit, < v7x's 64 MiB


def _cparams(n_axes):
    return pltpu.CompilerParams(
        dimension_semantics=("parallel",) * n_axes,
        vmem_limit_bytes=_VMEM_LIMIT)


# ----------------------------- kernel bodies -------------------------------

def _layernorm_f32(x, a, b, eps):
    # Matches the custom PyTorch LayerNorm exactly: mean over last dim,
    # UNBIASED std (n-1), eps added to std (not to variance).
    d = x.shape[-1]
    mean = jnp.mean(x, axis=-1, keepdims=True)
    cen = x - mean
    var = jnp.sum(cen * cen, axis=-1, keepdims=True) / (d - 1)
    return a * cen / (jnp.sqrt(var) + eps) + b


def _embed_kernel(x_ref, pe_ref, w_ref, b_ref, o_ref):
    # SEmbeddings + PositionalEncoding: (x @ W + b) * sqrt(d_model) + pe.
    # The sqrt(d_model) scale is folded into W and b at parameter-build time,
    # and pe is fed as a (S, d_model) block (no B*S tile materialized in HBM).
    y = jnp.dot(x_ref[0].astype(jnp.bfloat16), w_ref[...],
                preferred_element_type=jnp.float32)
    o_ref[0] = (y + b_ref[...] + pe_ref[...]).astype(o_ref.dtype)


def _ln_qkv_kernel(x_ref, a_ref, b_ref, w_ref, bias_ref, o_ref, *, eps):
    # Fused pre-LayerNorm + QKV projection (one d_model x 3*d_model matmul).
    xn = _layernorm_f32(x_ref[...], a_ref[...], b_ref[...], eps)
    y = jnp.dot(xn.astype(jnp.bfloat16), w_ref[...],
                preferred_element_type=jnp.float32) + bias_ref[...]
    o_ref[...] = y.astype(o_ref.dtype)


def _attn_kernel(qkv_ref, res_ref, wo_ref, bo_ref, o_ref,
                 *, num_heads, dk, scale):
    # One batch per grid step; all heads handled here (no JAX-level head
    # transposes).  Softmax in f32; matmuls in bf16 with f32 accumulation.
    # Full (S, 3*d_model) per batch is held in VMEM — fine for moderate S;
    # a flash-style KV tiling would be needed for very long sequences.
    D = num_heads * dk
    y = res_ref[0] + bo_ref[...]                     # residual + Wo bias (S, D)
    for hd in range(num_heads):
        lo = hd * dk
        q = qkv_ref[0, :, lo:lo + dk].astype(jnp.bfloat16)
        kT = qkv_ref[0, :, D + lo:D + lo + dk].T.astype(jnp.bfloat16)
        v = qkv_ref[0, :, 2 * D + lo:2 * D + lo + dk].astype(jnp.bfloat16)
        s = jnp.dot(q, kT, preferred_element_type=jnp.float32) * scale
        s = s - jnp.max(s, axis=-1, keepdims=True)
        p = jnp.exp(s)
        p = p * pl.reciprocal(jnp.sum(p, axis=-1, keepdims=True), approx=True)
        oh = jnp.dot(p.astype(jnp.bfloat16), v,
                     preferred_element_type=jnp.float32)        # (S, dk)
        # concat(heads) @ Wo  ==  sum_h  head_h @ Wo[h*dk:(h+1)*dk, :]
        y = y + jnp.dot(oh.astype(jnp.bfloat16), wo_ref[lo:lo + dk, :],
                        preferred_element_type=jnp.float32)
    o_ref[0] = y.astype(o_ref.dtype)


def _ln_mlp_kernel(x_ref, a_ref, b_ref, w1_ref, b1_ref, w2_ref, b2_ref, o_ref,
                   *, eps, residual):
    # Fused pre-LayerNorm + Linear + ReLU + Linear (+ optional residual).
    # Used for both the PositionwiseFeedForward sublayer and the final
    # encoder-norm + regress head.
    x = x_ref[...]
    xn = _layernorm_f32(x, a_ref[...], b_ref[...], eps)
    hid = jnp.dot(xn.astype(jnp.bfloat16), w1_ref[...],
                  preferred_element_type=jnp.float32) + b1_ref[...]
    hid = jnp.maximum(hid, 0.0)
    y = jnp.dot(hid.astype(jnp.bfloat16), w2_ref[...],
                preferred_element_type=jnp.float32) + b2_ref[...]
    if residual:
        y = y + x
    o_ref[...] = y.astype(o_ref.dtype)


# ----------------------------- wrappers -------------------------------------

def embed(x, pe, w, b):
    B, S, F = x.shape
    D = w.shape[1]
    ts = min(S, _ROW_TILE)
    return pl.pallas_call(
        _embed_kernel,
        out_shape=jax.ShapeDtypeStruct((B, S, D), jnp.float32),
        grid=(B, pl.cdiv(S, ts)),
        in_specs=[
            pl.BlockSpec((1, ts, F), lambda bi, si: (bi, si, 0)),
            pl.BlockSpec((ts, D), lambda bi, si: (si, 0)),
            pl.BlockSpec((F, D), lambda bi, si: (0, 0)),
            pl.BlockSpec((1, D), lambda bi, si: (0, 0)),
        ],
        out_specs=pl.BlockSpec((1, ts, D), lambda bi, si: (bi, si, 0)),
        compiler_params=_cparams(2),
    )(x, pe, w, b)


def ln_qkv(x, ln_a, ln_b, w, bias, *, eps=1e-6):
    M, D = x.shape
    N = w.shape[1]
    tm = min(M, _ROW_TILE)
    return pl.pallas_call(
        functools.partial(_ln_qkv_kernel, eps=eps),
        out_shape=jax.ShapeDtypeStruct((M, N), jnp.float32),
        grid=(pl.cdiv(M, tm),),
        in_specs=[
            pl.BlockSpec((tm, D), lambda i: (i, 0)),
            pl.BlockSpec((1, D), lambda i: (0, 0)),
            pl.BlockSpec((1, D), lambda i: (0, 0)),
            pl.BlockSpec((D, N), lambda i: (0, 0)),
            pl.BlockSpec((1, N), lambda i: (0, 0)),
        ],
        out_specs=pl.BlockSpec((tm, N), lambda i: (i, 0)),
        compiler_params=_cparams(1),
    )(x, ln_a, ln_b, w, bias)


def attention_block(qkv, res, wo, bo, *, num_heads):
    B, S, N3 = qkv.shape
    D = N3 // 3
    dk = D // num_heads
    return pl.pallas_call(
        functools.partial(_attn_kernel, num_heads=num_heads, dk=dk,
                          scale=1.0 / math.sqrt(dk)),
        out_shape=jax.ShapeDtypeStruct((B, S, D), jnp.float32),
        grid=(B,),
        in_specs=[
            pl.BlockSpec((1, S, N3), lambda b_: (b_, 0, 0)),
            pl.BlockSpec((1, S, D), lambda b_: (b_, 0, 0)),
            pl.BlockSpec((D, D), lambda b_: (0, 0)),
            pl.BlockSpec((1, D), lambda b_: (0, 0)),
        ],
        out_specs=pl.BlockSpec((1, S, D), lambda b_: (b_, 0, 0)),
        input_output_aliases={1: 0},          # residual accumulates in place
        compiler_params=_cparams(1),
    )(qkv, res, wo, bo)


def ln_mlp(x, ln_a, ln_b, w1, b1, w2, b2, *, residual, eps=1e-6):
    M, D = x.shape
    H = w1.shape[1]
    N = w2.shape[1]
    tm = min(M, _ROW_TILE)
    return pl.pallas_call(
        functools.partial(_ln_mlp_kernel, eps=eps, residual=residual),
        out_shape=jax.ShapeDtypeStruct((M, N), jnp.float32),
        grid=(pl.cdiv(M, tm),),
        in_specs=[
            pl.BlockSpec((tm, D), lambda i: (i, 0)),
            pl.BlockSpec((1, D), lambda i: (0, 0)),
            pl.BlockSpec((1, D), lambda i: (0, 0)),
            pl.BlockSpec((D, H), lambda i: (0, 0)),
            pl.BlockSpec((1, H), lambda i: (0, 0)),
            pl.BlockSpec((H, N), lambda i: (0, 0)),
            pl.BlockSpec((1, N), lambda i: (0, 0)),
        ],
        out_specs=pl.BlockSpec((tm, N), lambda i: (i, 0)),
        input_output_aliases=({0: 0} if residual else {}),
        compiler_params=_cparams(1),
    )(x, ln_a, ln_b, w1, b1, w2, b2)


# ----------------------------- parameters -----------------------------------

def _round_up(n, m):
    return ((n + m - 1) // m) * m


def _xavier(key, shape):
    fan_in, fan_out = shape
    limit = math.sqrt(6.0 / (fan_in + fan_out))
    return jax.random.uniform(key, shape, jnp.float32, -limit, limit)


def _bias(key, n):
    return jax.random.uniform(key, (n,), jnp.float32, -0.05, 0.05)


def positional_encoding(max_len, d_model):
    # Intentionally uses log(1000.0) — matches the reference model.py.
    pos = jnp.arange(max_len, dtype=jnp.float32)[:, None]
    div = jnp.exp(jnp.arange(0, d_model, 2, dtype=jnp.float32)
                  * (-(math.log(1000.0) / d_model)))
    pe = jnp.zeros((max_len, d_model), jnp.float32)
    pe = pe.at[:, 0::2].set(jnp.sin(pos * div))
    pe = pe.at[:, 1::2].set(jnp.cos(pos * div))
    return pe


def build_params(key, *, num_features, d_model, h, d_ff, n_blocks, ntarget,
                 max_len=5000):
    assert d_model % h == 0
    keys = iter(jax.random.split(key, 6 + 12 * n_blocks))
    sqrt_d = math.sqrt(d_model)
    hmid = d_model // 2
    hp = _round_up(max(hmid, 1), 128)     # lane-dense padded regress hidden
    np_ = _round_up(ntarget, 128)         # lane-dense padded regress output

    emb_w = _xavier(next(keys), (num_features, d_model))
    emb_b = _bias(next(keys), d_model)
    rw1 = _xavier(next(keys), (d_model, hmid))
    rb1 = _bias(next(keys), hmid)
    rw2 = _xavier(next(keys), (hmid, ntarget))
    rb2 = _bias(next(keys), ntarget)

    p = {
        "pe": positional_encoding(max_len, d_model),
        # SEmbeddings: Linear(F, d_model); *sqrt(d_model) folded into W and b.
        "emb_w": (emb_w * sqrt_d).astype(jnp.bfloat16),
        "emb_b": (emb_b * sqrt_d).reshape(1, d_model),
        # final encoder LayerNorm
        "lnf_a": jnp.ones((1, d_model), jnp.float32),
        "lnf_b": jnp.zeros((1, d_model), jnp.float32),
        # regress head, zero-padded (exact: padded rows/cols contribute 0)
        "rw1": jnp.zeros((d_model, hp), jnp.float32)
                  .at[:, :hmid].set(rw1).astype(jnp.bfloat16),
        "rb1": jnp.zeros((1, hp), jnp.float32).at[0, :hmid].set(rb1),
        "rw2": jnp.zeros((hp, np_), jnp.float32)
                  .at[:hmid, :ntarget].set(rw2).astype(jnp.bfloat16),
        "rb2": jnp.zeros((1, np_), jnp.float32).at[0, :ntarget].set(rb2),
        "layers": [],
    }
    for _ in range(n_blocks):
        wq = _xavier(next(keys), (d_model, d_model))
        bq = _bias(next(keys), d_model)
        wk = _xavier(next(keys), (d_model, d_model))
        bk = _bias(next(keys), d_model)
        wv = _xavier(next(keys), (d_model, d_model))
        bv = _bias(next(keys), d_model)
        lyr = {
            "ln1_a": jnp.ones((1, d_model), jnp.float32),
            "ln1_b": jnp.zeros((1, d_model), jnp.float32),
            # fused QKV weight: one (d_model, 3*d_model) matmul per layer
            "wqkv": jnp.concatenate([wq, wk, wv], axis=1).astype(jnp.bfloat16),
            "bqkv": jnp.concatenate([bq, bk, bv]).reshape(1, 3 * d_model),
            "wo": _xavier(next(keys), (d_model, d_model)).astype(jnp.bfloat16),
            "bo": _bias(next(keys), d_model).reshape(1, d_model),
            "ln2_a": jnp.ones((1, d_model), jnp.float32),
            "ln2_b": jnp.zeros((1, d_model), jnp.float32),
            "w1": _xavier(next(keys), (d_model, d_ff)).astype(jnp.bfloat16),
            "b1": _bias(next(keys), d_ff).reshape(1, d_ff),
            "w2": _xavier(next(keys), (d_ff, d_model)).astype(jnp.bfloat16),
            "b2": _bias(next(keys), d_model).reshape(1, d_model),
        }
        p["layers"].append(lyr)
    return p


# ----------------------------- forward pass ---------------------------------

def te_forward(params, x, *, h, ntarget, eps=1e-6):
    B, S, _ = x.shape
    d_model = params["emb_b"].shape[-1]

    # SEmbeddings * sqrt(d_model) + PositionalEncoding (fused, pe not tiled
    # into HBM).  dropout_embed / positional dropout: identity (eval mode).
    xr = embed(x, params["pe"], params["emb_w"], params["emb_b"])
    xr = xr.reshape(B * S, d_model)

    for lyr in params["layers"]:
        # self-attention sublayer: LN -> fused QKV -> per-batch attention
        # (+ Wo projection + residual, accumulated in place)
        qkv = ln_qkv(xr, lyr["ln1_a"], lyr["ln1_b"],
                     lyr["wqkv"], lyr["bqkv"], eps=eps)
        xr = attention_block(qkv.reshape(B, S, 3 * d_model),
                             xr.reshape(B, S, d_model),
                             lyr["wo"], lyr["bo"],
                             num_heads=h).reshape(B * S, d_model)
        # feed-forward sublayer: LN -> w1 -> relu -> w2 -> residual (fused)
        xr = ln_mlp(xr, lyr["ln2_a"], lyr["ln2_b"],
                    lyr["w1"], lyr["b1"], lyr["w2"], lyr["b2"],
                    residual=True, eps=eps)

    # final encoder LayerNorm + regress head (Linear -> ReLU -> Linear),
    # fused, lane-dense padded output sliced back to ntarget.
    out_p = ln_mlp(xr, params["lnf_a"], params["lnf_b"],
                   params["rw1"], params["rb1"], params["rw2"], params["rb2"],
                   residual=False, eps=eps)
    return out_p[:, :ntarget].reshape(B, S, ntarget)


# ----------------------------- main ------------------------------------------

if __name__ == "__main__":
    B, S, F = 2, 8, 4                 # batch, seq, num_features
    d_model, num_heads, d_ff = 32, 4, 64
    n_blocks, ntarget = 2, 3

    key = jax.random.PRNGKey(0)
    k_param, k_x = jax.random.split(key)
    params = build_params(k_param, num_features=F, d_model=d_model,
                          h=num_heads, d_ff=d_ff, n_blocks=n_blocks,
                          ntarget=ntarget)
    x = jax.random.normal(k_x, (B, S, F), jnp.float32)

    fwd = jax.jit(functools.partial(te_forward, h=num_heads, ntarget=ntarget))
    out = jax.block_until_ready(fwd(params, x))
    assert out.shape == (B, S, ntarget)
    assert bool(jnp.all(jnp.isfinite(out)))
    print("KERNEL_OK")
</pallas_src>

<mosaic_0001>
module attributes {stable_mosaic.version = 11 : i64} {
  func.func @_embed_kernel(%arg0: i32, %arg1: i32, %arg2: memref<1x8x4xf32, #tpu.memory_space<vmem>>, %arg3: memref<8x32xf32, #tpu.memory_space<vmem>>, %arg4: memref<4x32xbf16, #tpu.memory_space<vmem>>, %arg5: memref<1x32xf32, #tpu.memory_space<vmem>>, %arg6: memref<1x8x32xf32, #tpu.memory_space<vmem>>) attributes {dimension_semantics = [#tpu.dimension_semantics<parallel>, #tpu.dimension_semantics<parallel>], iteration_bounds = array<i64: 2, 1>, scalar_prefetch = 0 : i64, scratch_operands = 0 : i64, tpu.core_type = #tpu.core_type<tc>, window_params = [{transform_indices = @transform_0, window_bounds = array<i64: 1, 8, 4>}, {transform_indices = @transform_1, window_bounds = array<i64: 8, 32>}, {pipeline_mode = #tpu.pipeline_mode<synchronous>, transform_indices = @transform_2, window_bounds = array<i64: 4, 32>}, {pipeline_mode = #tpu.pipeline_mode<synchronous>, transform_indices = @transform_3, window_bounds = array<i64: 1, 32>}, {transform_indices = @transform_4, window_bounds = array<i64: 1, 8, 32>}]} {
    %c0 = arith.constant 0 : index
    %c0_0 = arith.constant 0 : index
    %c0_1 = arith.constant 0 : index
    %0 = vector.load %arg2[%c0, %c0_0, %c0_1] : memref<1x8x4xf32, #tpu.memory_space<vmem>>, vector<1x8x4xf32>
    %1 = vector.shape_cast %0 : vector<1x8x4xf32> to vector<8x4xf32>
    %2 = arith.truncf %1 : vector<8x4xf32> to vector<8x4xbf16>
    %c0_2 = arith.constant 0 : index
    %c0_3 = arith.constant 0 : index
    %3 = vector.load %arg4[%c0_2, %c0_3] : memref<4x32xbf16, #tpu.memory_space<vmem>>, vector<4x32xbf16>
    %cst = arith.constant dense<0.000000e+00> : vector<8x32xf32>
    %4 = tpu.matmul %2, %3, %cst {dimension_numbers = #tpu.dot_dimension_numbers<[1], [0], [0], [1], [0, 0, 1, 1], [], []>} : vector<8x4xbf16>, vector<4x32xbf16>, vector<8x32xf32> -> vector<8x32xf32>
    %c0_4 = arith.constant 0 : index
    %c0_5 = arith.constant 0 : index
    %5 = vector.load %arg5[%c0_4, %c0_5] : memref<1x32xf32, #tpu.memory_space<vmem>>, vector<1x32xf32>
    %6 = vector.broadcast %5 : vector<1x32xf32> to vector<8x32xf32>
    %7 = arith.addf %4, %6 : vector<8x32xf32>
    %c0_6 = arith.constant 0 : index
    %c0_7 = arith.constant 0 : index
    %8 = vector.load %arg3[%c0_6, %c0_7] : memref<8x32xf32, #tpu.memory_space<vmem>>, vector<8x32xf32>
    %9 = arith.addf %7, %8 : vector<8x32xf32>
    %c0_8 = arith.constant 0 : index
    %c0_9 = arith.constant 0 : index
    %c0_10 = arith.constant 0 : index
    %10 = vector.load %arg6[%c0_8, %c0_9, %c0_10] : memref<1x8x32xf32, #tpu.memory_space<vmem>>, vector<1x8x32xf32>
    %11 = vector.shape_cast %10 : vector<1x8x32xf32> to vector<8x32xf32>
    %12 = vector.shape_cast %9 : vector<8x32xf32> to vector<1x8x32xf32>
    tpu.vector_store %arg6[%c0_8, %c0_9, %c0_10], %12 {strides = array<i32>} : memref<1x8x32xf32, #tpu.memory_space<vmem>>, vector<1x8x32xf32>,
    return
  }
  func.func @transform_0(%arg0: i32, %arg1: i32) -> (i32, i32, i32) {
    %c0_i32 = arith.constant 0 : i32
    %c0_i32_0 = arith.constant 0 : i32
    return %arg0, %arg1, %c0_i32 : i32, i32, i32
  }
  func.func @transform_1(%arg0: i32, %arg1: i32) -> (i32, i32) {
    %c0_i32 = arith.constant 0 : i32
    %c0_i32_0 = arith.constant 0 : i32
    return %arg1, %c0_i32 : i32, i32
  }
  func.func @transform_2(%arg0: i32, %arg1: i32) -> (i32, i32) {
    %c0_i32 = arith.constant 0 : i32
    %c0_i32_0 = arith.constant 0 : i32
    %c0_i32_1 = arith.constant 0 : i32
    return %c0_i32, %c0_i32_0 : i32, i32
  }
  func.func @transform_3(%arg0: i32, %arg1: i32) -> (i32, i32) {
    %c0_i32 = arith.constant 0 : i32
    %c0_i32_0 = arith.constant 0 : i32
    %c0_i32_1 = arith.constant 0 : i32
    return %c0_i32, %c0_i32_0 : i32, i32
  }
  func.func @transform_4(%arg0: i32, %arg1: i32) -> (i32, i32, i32) {
    %c0_i32 = arith.constant 0 : i32
    %c0_i32_0 = arith.constant 0 : i32
    return %arg0, %arg1, %c0_i32 : i32, i32, i32
  }
}

module attributes {stable_mosaic.version = 11 : i64} {
  func.func @_ln_qkv_kernel(%arg0: i32, %arg1: memref<16x32xf32, #tpu.memory_space<vmem>>, %arg2: memref<1x32xf32, #tpu.memory_space<vmem>>, %arg3: memref<1x32xf32, #tpu.memory_space<vmem>>, %arg4: memref<32x96xbf16, #tpu.memory_space<vmem>>, %arg5: memref<1x96xf32, #tpu.memory_space<vmem>>, %arg6: memref<16x96xf32, #tpu.memory_space<vmem>>) attributes {dimension_semantics = [#tpu.dimension_semantics<parallel>], iteration_bounds = array<i64: 1>, scalar_prefetch = 0 : i64, scratch_operands = 0 : i64, tpu.core_type = #tpu.core_type<tc>, window_params = [{transform_indices = @transform_0, window_bounds = array<i64: 16, 32>}, {pipeline_mode = #tpu.pipeline_mode<synchronous>, transform_indices = @transform_1, window_bounds = array<i64: 1, 32>}, {pipeline_mode = #tpu.pipeline_mode<synchronous>, transform_indices = @transform_2, window_bounds = array<i64: 1, 32>}, {pipeline_mode = #tpu.pipeline_mode<synchronous>, transform_indices = @transform_3, window_bounds = array<i64: 32, 96>}, {pipeline_mode = #tpu.pipeline_mode<synchronous>, transform_indices = @transform_4, window_bounds = array<i64: 1, 96>}, {transform_indices = @transform_5, window_bounds = array<i64: 16, 96>}]} {
    %c0 = arith.constant 0 : index
    %c0_0 = arith.constant 0 : index
    %0 = vector.load %arg1[%c0, %c0_0] : memref<16x32xf32, #tpu.memory_space<vmem>>, vector<16x32xf32>
    %c0_1 = arith.constant 0 : index
    %c0_2 = arith.constant 0 : index
    %1 = vector.load %arg2[%c0_1, %c0_2] : memref<1x32xf32, #tpu.memory_space<vmem>>, vector<1x32xf32>
    %c0_3 = arith.constant 0 : index
    %c0_4 = arith.constant 0 : index
    %2 = vector.load %arg3[%c0_3, %c0_4] : memref<1x32xf32, #tpu.memory_space<vmem>>, vector<1x32xf32>
    %cst = arith.constant dense<0.000000e+00> : vector<16xf32>
    %3 = vector.multi_reduction <add>, %0, %cst [1] : vector<16x32xf32> to vector<16xf32>
    %4 = vector.shape_cast %3 : vector<16xf32> to vector<16x1xf32>
    %cst_5 = arith.constant 3.200000e+01 : f32
    %5 = vector.broadcast %cst_5 : f32 to vector<16x1xf32>
    %6 = arith.divf %4, %5 : vector<16x1xf32>
    %7 = vector.broadcast %6 : vector<16x1xf32> to vector<16x32xf32>
    %8 = arith.subf %0, %7 : vector<16x32xf32>
    %9 = arith.mulf %8, %8 : vector<16x32xf32>
    %cst_6 = arith.constant dense<0.000000e+00> : vector<16xf32>
    %10 = vector.multi_reduction <add>, %9, %cst_6 [1] : vector<16x32xf32> to vector<16xf32>
    %11 = vector.shape_cast %10 : vector<16xf32> to vector<16x1xf32>
    %cst_7 = arith.constant 3.100000e+01 : f32
    %12 = vector.broadcast %cst_7 : f32 to vector<16x1xf32>
    %13 = arith.divf %11, %12 : vector<16x1xf32>
    %14 = vector.broadcast %1 : vector<1x32xf32> to vector<16x32xf32>
    %15 = arith.mulf %14, %8 : vector<16x32xf32>
    %16 = math.sqrt %13 : vector<16x1xf32>
    %cst_8 = arith.constant 9.99999997E-7 : f32
    %17 = vector.broadcast %cst_8 : f32 to vector<16x1xf32>
    %18 = arith.addf %16, %17 : vector<16x1xf32>
    %19 = vector.broadcast %18 : vector<16x1xf32> to vector<16x32xf32>
    %20 = arith.divf %15, %19 : vector<16x32xf32>
    %21 = vector.broadcast %2 : vector<1x32xf32> to vector<16x32xf32>
    %22 = arith.addf %20, %21 : vector<16x32xf32>
    %23 = arith.truncf %22 : vector<16x32xf32> to vector<16x32xbf16>
    %c0_9 = arith.constant 0 : index
    %c0_10 = arith.constant 0 : index
    %24 = vector.load %arg4[%c0_9, %c0_10] : memref<32x96xbf16, #tpu.memory_space<vmem>>, vector<32x96xbf16>
    %cst_11 = arith.constant dense<0.000000e+00> : vector<16x96xf32>
    %25 = tpu.matmul %23, %24, %cst_11 {dimension_numbers = #tpu.dot_dimension_numbers<[1], [0], [0], [1], [0, 0, 1, 1], [], []>} : vector<16x32xbf16>, vector<32x96xbf16>, vector<16x96xf32> -> vector<16x96xf32>
    %c0_12 = arith.constant 0 : index
    %c0_13 = arith.constant 0 : index
    %26 = vector.load %arg5[%c0_12, %c0_13] : memref<1x96xf32, #tpu.memory_space<vmem>>, vector<1x96xf32>
    %27 = vector.broadcast %26 : vector<1x96xf32> to vector<16x96xf32>
    %28 = arith.addf %25, %27 : vector<16x96xf32>
    %c0_14 = arith.constant 0 : index
    %c0_15 = arith.constant 0 : index
    %29 = vector.load %arg6[%c0_14, %c0_15] : memref<16x96xf32, #tpu.memory_space<vmem>>, vector<16x96xf32>
    tpu.vector_store %arg6[%c0_14, %c0_15], %28 {strides = array<i32>} : memref<16x96xf32, #tpu.memory_space<vmem>>, vector<16x96xf32>,
    return
  }
  func.func @transform_0(%arg0: i32) -> (i32, i32) {
    %c0_i32 = arith.constant 0 : i32
    %c0_i32_0 = arith.constant 0 : i32
    return %arg0, %c0_i32 : i32, i32
  }
  func.func @transform_1(%arg0: i32) -> (i32, i32) {
    %c0_i32 = arith.constant 0 : i32
    %c0_i32_0 = arith.constant 0 : i32
    %c0_i32_1 = arith.constant 0 : i32
    return %c0_i32, %c0_i32_0 : i32, i32
  }
  func.func @transform_2(%arg0: i32) -> (i32, i32) {
    %c0_i32 = arith.constant 0 : i32
    %c0_i32_0 = arith.constant 0 : i32
    %c0_i32_1 = arith.constant 0 : i32
    return %c0_i32, %c0_i32_0 : i32, i32
  }
  func.func @transform_3(%arg0: i32) -> (i32, i32) {
    %c0_i32 = arith.constant 0 : i32
    %c0_i32_0 = arith.constant 0 : i32
    %c0_i32_1 = arith.constant 0 : i32
    return %c0_i32, %c0_i32_0 : i32, i32
  }
  func.func @transform_4(%arg0: i32) -> (i32, i32) {
    %c0_i32 = arith.constant 0 : i32
    %c0_i32_0 = arith.constant 0 : i32
    %c0_i32_1 = arith.constant 0 : i32
    return %c0_i32, %c0_i32_0 : i32, i32
  }
  func.func @transform_5(%arg0: i32) -> (i32, i32) {
    %c0_i32 = arith.constant 0 : i32
    %c0_i32_0 = arith.constant 0 : i32
    return %arg0, %c0_i32 : i32, i32
  }
}

module attributes {stable_mosaic.version = 11 : i64} {
  func.func @_attn_kernel(%arg0: i32, %arg1: memref<1x8x96xf32, #tpu.memory_space<vmem>>, %arg2: memref<1x8x32xf32, #tpu.memory_space<vmem>>, %arg3: memref<32x32xbf16, #tpu.memory_space<vmem>>, %arg4: memref<1x32xf32, #tpu.memory_space<vmem>>, %arg5: memref<1x8x32xf32, #tpu.memory_space<vmem>>) attributes {dimension_semantics = [#tpu.dimension_semantics<parallel>], iteration_bounds = array<i64: 2>, scalar_prefetch = 0 : i64, scratch_operands = 0 : i64, tpu.core_type = #tpu.core_type<tc>, window_params = [{transform_indices = @transform_0, window_bounds = array<i64: 1, 8, 96>}, {transform_indices = @transform_1, window_bounds = array<i64: 1, 8, 32>}, {pipeline_mode = #tpu.pipeline_mode<synchronous>, transform_indices = @transform_2, window_bounds = array<i64: 32, 32>}, {pipeline_mode = #tpu.pipeline_mode<synchronous>, transform_indices = @transform_3, window_bounds = array<i64: 1, 32>}, {transform_indices = @transform_4, window_bounds = array<i64: 1, 8, 32>}]} {
    %c0 = arith.constant 0 : index
    %c0_0 = arith.constant 0 : index
    %c0_1 = arith.constant 0 : index
    %0 = vector.load %arg2[%c0, %c0_0, %c0_1] : memref<1x8x32xf32, #tpu.memory_space<vmem>>, vector<1x8x32xf32>
    %1 = vector.shape_cast %0 : vector<1x8x32xf32> to vector<8x32xf32>
    %c0_2 = arith.constant 0 : index
    %c0_3 = arith.constant 0 : index
    %2 = vector.load %arg4[%c0_2, %c0_3] : memref<1x32xf32, #tpu.memory_space<vmem>>, vector<1x32xf32>
    %3 = vector.broadcast %2 : vector<1x32xf32> to vector<8x32xf32>
    %4 = arith.addf %1, %3 : vector<8x32xf32>
    %c0_4 = arith.constant 0 : index
    %c0_5 = arith.constant 0 : index
    %c0_6 = arith.constant 0 : index
    %5 = vector.load %arg1[%c0_4, %c0_5, %c0_6] : memref<1x8x96xf32, #tpu.memory_space<vmem>>, vector<1x8x8xf32>
    %6 = vector.shape_cast %5 : vector<1x8x8xf32> to vector<8x8xf32>
    %7 = arith.truncf %6 : vector<8x8xf32> to vector<8x8xbf16>
    %c0_7 = arith.constant 0 : index
    %c0_8 = arith.constant 0 : index
    %c32 = arith.constant 32 : index
    %8 = vector.load %arg1[%c0_7, %c0_8, %c32] : memref<1x8x96xf32, #tpu.memory_space<vmem>>, vector<1x8x8xf32>
    %9 = vector.shape_cast %8 : vector<1x8x8xf32> to vector<8x8xf32>
    %10 = tpu.transpose %9, [1, 0] : vector<8x8xf32> -> vector<8x8xf32>
    %11 = arith.truncf %10 : vector<8x8xf32> to vector<8x8xbf16>
    %c0_9 = arith.constant 0 : index
    %c0_10 = arith.constant 0 : index
    %c64 = arith.constant 64 : index
    %12 = vector.load %arg1[%c0_9, %c0_10, %c64] : memref<1x8x96xf32, #tpu.memory_space<vmem>>, vector<1x8x8xf32>
    %13 = vector.shape_cast %12 : vector<1x8x8xf32> to vector<8x8xf32>
    %14 = arith.truncf %13 : vector<8x8xf32> to vector<8x8xbf16>
    %cst = arith.constant dense<0.000000e+00> : vector<8x8xf32>
    %15 = tpu.matmul %7, %11, %cst {dimension_numbers = #tpu.dot_dimension_numbers<[1], [0], [0], [1], [0, 0, 1, 1], [], []>} : vector<8x8xbf16>, vector<8x8xbf16>, vector<8x8xf32> -> vector<8x8xf32>
    %cst_11 = arith.constant 0.353553385 : f32
    %16 = vector.broadcast %cst_11 : f32 to vector<8x8xf32>
    %17 = arith.mulf %15, %16 : vector<8x8xf32>
    %cst_12 = arith.constant dense<0xFF800000> : vector<8xf32>
    %18 = vector.multi_reduction <maximumf>, %17, %cst_12 [1] : vector<8x8xf32> to vector<8xf32>
    %19 = vector.shape_cast %18 : vector<8xf32> to vector<8x1xf32>
    %20 = vector.broadcast %19 : vector<8x1xf32> to vector<8x8xf32>
    %21 = arith.subf %17, %20 : vector<8x8xf32>
    %22 = math.exp %21 : vector<8x8xf32>
    %cst_13 = arith.constant dense<0.000000e+00> : vector<8xf32>
    %23 = vector.multi_reduction <add>, %22, %cst_13 [1] : vector<8x8xf32> to vector<8xf32>
    %24 = vector.shape_cast %23 : vector<8xf32> to vector<8x1xf32>
    %25 = tpu.reciprocal %24 {approx = true} : vector<8x1xf32> -> vector<8x1xf32>
    %26 = vector.broadcast %25 : vector<8x1xf32> to vector<8x8xf32>
    %27 = arith.mulf %22, %26 : vector<8x8xf32>
    %28 = arith.truncf %27 : vector<8x8xf32> to vector<8x8xbf16>
    %cst_14 = arith.constant dense<0.000000e+00> : vector<8x8xf32>
    %29 = tpu.matmul %28, %14, %cst_14 {dimension_numbers = #tpu.dot_dimension_numbers<[1], [0], [0], [1], [0, 0, 1, 1], [], []>} : vector<8x8xbf16>, vector<8x8xbf16>, vector<8x8xf32> -> vector<8x8xf32>
    %30 = arith.truncf %29 : vector<8x8xf32> to vector<8x8xbf16>
    %c0_15 = arith.constant 0 : index
    %c0_16 = arith.constant 0 : index
    %31 = vector.load %arg3[%c0_15, %c0_16] : memref<32x32xbf16, #tpu.memory_space<vmem>>, vector<8x32xbf16>
    %cst_17 = arith.constant dense<0.000000e+00> : vector<8x32xf32>
    %32 = tpu.matmul %30, %31, %cst_17 {dimension_numbers = #tpu.dot_dimension_numbers<[1], [0], [0], [1], [0, 0, 1, 1], [], []>} : vector<8x8xbf16>, vector<8x32xbf16>, vector<8x32xf32> -> vector<8x32xf32>
    %33 = arith.addf %4, %32 : vector<8x32xf32>
    %c0_18 = arith.constant 0 : index
    %c0_19 = arith.constant 0 : index
    %c8 = arith.constant 8 : index
    %34 = vector.load %arg1[%c0_18, %c0_19, %c8] : memref<1x8x96xf32, #tpu.memory_space<vmem>>, vector<1x8x8xf32>
    %35 = vector.shape_cast %34 : vector<1x8x8xf32> to vector<8x8xf32>
    %36 = arith.truncf %35 : vector<8x8xf32> to vector<8x8xbf16>
    %c0_20 = arith.constant 0 : index
    %c0_21 = arith.constant 0 : index
    %c40 = arith.constant 40 : index
    %37 = vector.load %arg1[%c0_20, %c0_21, %c40] : memref<1x8x96xf32, #tpu.memory_space<vmem>>, vector<1x8x8xf32>
    %38 = vector.shape_cast %37 : vector<1x8x8xf32> to vector<8x8xf32>
    %39 = tpu.transpose %38, [1, 0] : vector<8x8xf32> -> vector<8x8xf32>
    %40 = arith.truncf %39 : vector<8x8xf32> to vector<8x8xbf16>
    %c0_22 = arith.constant 0 : index
    %c0_23 = arith.constant 0 : index
    %c72 = arith.constant 72 : index
    %41 = vector.load %arg1[%c0_22, %c0_23, %c72] : memref<1x8x96xf32, #tpu.memory_space<vmem>>, vector<1x8x8xf32>
    %42 = vector.shape_cast %41 : vector<1x8x8xf32> to vector<8x8xf32>
    %43 = arith.truncf %42 : vector<8x8xf32> to vector<8x8xbf16>
    %cst_24 = arith.constant dense<0.000000e+00> : vector<8x8xf32>
    %44 = tpu.matmul %36, %40, %cst_24 {dimension_numbers = #tpu.dot_dimension_numbers<[1], [0], [0], [1], [0, 0, 1, 1], [], []>} : vector<8x8xbf16>, vector<8x8xbf16>, vector<8x8xf32> -> vector<8x8xf32>
    %cst_25 = arith.constant 0.353553385 : f32
    %45 = vector.broadcast %cst_25 : f32 to vector<8x8xf32>
    %46 = arith.mulf %44, %45 : vector<8x8xf32>
    %cst_26 = arith.constant dense<0xFF800000> : vector<8xf32>
    %47 = vector.multi_reduction <maximumf>, %46, %cst_26 [1] : vector<8x8xf32> to vector<8xf32>
    %48 = vector.shape_cast %47 : vector<8xf32> to vector<8x1xf32>
    %49 = vector.broadcast %48 : vector<8x1xf32> to vector<8x8xf32>
    %50 = arith.subf %46, %49 : vector<8x8xf32>
    %51 = math.exp %50 : vector<8x8xf32>
    %cst_27 = arith.constant dense<0.000000e+00> : vector<8xf32>
    %52 = vector.multi_reduction <add>, %51, %cst_27 [1] : vector<8x8xf32> to vector<8xf32>
    %53 = vector.shape_cast %52 : vector<8xf32> to vector<8x1xf32>
    %54 = tpu.reciprocal %53 {approx = true} : vector<8x1xf32> -> vector<8x1xf32>
    %55 = vector.broadcast %54 : vector<8x1xf32> to vector<8x8xf32>
    %56 = arith.mulf %51, %55 : vector<8x8xf32>
    %57 = arith.truncf %56 : vector<8x8xf32> to vector<8x8xbf16>
    %cst_28 = arith.constant dense<0.000000e+00> : vector<8x8xf32>
    %58 = tpu.matmul %57, %43, %cst_28 {dimension_numbers = #tpu.dot_dimension_numbers<[1], [0], [0], [1], [0, 0, 1, 1], [], []>} : vector<8x8xbf16>, vector<8x8xbf16>, vector<8x8xf32> -> vector<8x8xf32>
    %59 = arith.truncf %58 : vector<8x8xf32> to vector<8x8xbf16>
    %c8_29 = arith.constant 8 : index
    %c0_30 = arith.constant 0 : index
    %60 = vector.load %arg3[%c8_29, %c0_30] : memref<32x32xbf16, #tpu.memory_space<vmem>>, vector<8x32xbf16>
    %cst_31 = arith.constant dense<0.000000e+00> : vector<8x32xf32>
    %61 = tpu.matmul %59, %60, %cst_31 {dimension_numbers = #tpu.dot_dimension_numbers<[1], [0], [0], [1], [0, 0, 1, 1], [], []>} : vector<8x8xbf16>, vector<8x32xbf16>, vector<8x32xf32> -> vector<8x32xf32>
    %62 = arith.addf %33, %61 : vector<8x32xf32>
    %c0_32 = arith.constant 0 : index
    %c0_33 = arith.constant 0 : index
    %c16 = arith.constant 16 : index
    %63 = vector.load %arg1[%c0_32, %c0_33, %c16] : memref<1x8x96xf32, #tpu.memory_space<vmem>>, vector<1x8x8xf32>
    %64 = vector.shape_cast %63 : vector<1x8x8xf32> to vector<8x8xf32>
    %65 = arith.truncf %64 : vector<8x8xf32> to vector<8x8xbf16>
    %c0_34 = arith.constant 0 : index
    %c0_35 = arith.constant 0 : index
    %c48 = arith.constant 48 : index
    %66 = vector.load %arg1[%c0_34, %c0_35, %c48] : memref<1x8x96xf32, #tpu.memory_space<vmem>>, vector<1x8x8xf32>
    %67 = vector.shape_cast %66 : vector<1x8x8xf32> to vector<8x8xf32>
    %68 = tpu.transpose %67, [1, 0] : vector<8x8xf32> -> vector<8x8xf32>
    %69 = arith.truncf %68 : vector<8x8xf32> to vector<8x8xbf16>
    %c0_36 = arith.constant 0 : index
    %c0_37 = arith.constant 0 : index
    %c80 = arith.constant 80 : index
    %70 = vector.load %arg1[%c0_36, %c0_37, %c80] : memref<1x8x96xf32, #tpu.memory_space<vmem>>, vector<1x8x8xf32>
    %71 = vector.shape_cast %70 : vector<1x8x8xf32> to vector<8x8xf32>
    %72 = arith.truncf %71 : vector<8x8xf32> to vector<8x8xbf16>
    %cst_38 = arith.constant dense<0.000000e+00> : vector<8x8xf32>
    %73 = tpu.matmul %65, %69, %cst_38 {dimension_numbers = #tpu.dot_dimension_numbers<[1], [0], [0], [1], [0, 0, 1, 1], [], []>} : vector<8x8xbf16>, vector<8x8xbf16>, vector<8x8xf32> -> vector<8x8xf32>
    %cst_39 = arith.constant 0.353553385 : f32
    %74 = vector.broadcast %cst_39 : f32 to vector<8x8xf32>
    %75 = arith.mulf %73, %74 : vector<8x8xf32>
    %cst_40 = arith.constant dense<0xFF800000> : vector<8xf32>
    %76 = vector.multi_reduction <maximumf>, %75, %cst_40 [1] : vector<8x8xf32> to vector<8xf32>
    %77 = vector.shape_cast %76 : vector<8xf32> to vector<8x1xf32>
    %78 = vector.broadcast %77 : vector<8x1xf32> to vector<8x8xf32>
    %79 = arith.subf %75, %78 : vector<8x8xf32>
    %80 = math.exp %79 : vector<8x8xf32>
    %cst_41 = arith.constant dense<0.000000e+00> : vector<8xf32>
    %81 = vector.multi_reduction <add>, %80, %cst_41 [1] : vector<8x8xf32> to vector<8xf32>
    %82 = vector.shape_cast %81 : vector<8xf32> to vector<8x1xf32>
    %83 = tpu.reciprocal %82 {approx = true} : vector<8x1xf32> -> vector<8x1xf32>
    %84 = vector.broadcast %83 : vector<8x1xf32> to vector<8x8xf32>
    %85 = arith.mulf %80, %84 : vector<8x8xf32>
    %86 = arith.truncf %85 : vector<8x8xf32> to vector<8x8xbf16>
    %cst_42 = arith.constant dense<0.000000e+00> : vector<8x8xf32>
    %87 = tpu.matmul %86, %72, %cst_42 {dimension_numbers = #tpu.dot_dimension_numbers<[1], [0], [0], [1], [0, 0, 1, 1], [], []>} : vector<8x8xbf16>, vector<8x8xbf16>, vector<8x8xf32> -> vector<8x8xf32>
    %88 = arith.truncf %87 : vector<8x8xf32> to vector<8x8xbf16>
    %c16_43 = arith.constant 16 : index
    %c0_44 = arith.constant 0 : index
    %89 = vector.load %arg3[%c16_43, %c0_44] : memref<32x32xbf16, #tpu.memory_space<vmem>>, vector<8x32xbf16>
    %cst_45 = arith.constant dense<0.000000e+00> : vector<8x32xf32>
    %90 = tpu.matmul %88, %89, %cst_45 {dimension_numbers = #tpu.dot_dimension_numbers<[1], [0], [0], [1], [0, 0, 1, 1], [], []>} : vector<8x8xbf16>, vector<8x32xbf16>, vector<8x32xf32> -> vector<8x32xf32>
    %91 = arith.addf %62, %90 : vector<8x32xf32>
    %c0_46 = arith.constant 0 : index
    %c0_47 = arith.constant 0 : index
    %c24 = arith.constant 24 : index
    %92 = vector.load %arg1[%c0_46, %c0_47, %c24] : memref<1x8x96xf32, #tpu.memory_space<vmem>>, vector<1x8x8xf32>
    %93 = vector.shape_cast %92 : vector<1x8x8xf32> to vector<8x8xf32>
    %94 = arith.truncf %93 : vector<8x8xf32> to vector<8x8xbf16>
    %c0_48 = arith.constant 0 : index
    %c0_49 = arith.constant 0 : index
    %c56 = arith.constant 56 : index
    %95 = vector.load %arg1[%c0_48, %c0_49, %c56] : memref<1x8x96xf32, #tpu.memory_space<vmem>>, vector<1x8x8xf32>
    %96 = vector.shape_cast %95 : vector<1x8x8xf32> to vector<8x8xf32>
    %97 = tpu.transpose %96, [1, 0] : vector<8x8xf32> -> vector<8x8xf32>
    %98 = arith.truncf %97 : vector<8x8xf32> to vector<8x8xbf16>
    %c0_50 = arith.constant 0 : index
    %c0_51 = arith.constant 0 : index
    %c88 = arith.constant 88 : index
    %99 = vector.load %arg1[%c0_50, %c0_51, %c88] : memref<1x8x96xf32, #tpu.memory_space<vmem>>, vector<1x8x8xf32>
    %100 = vector.shape_cast %99 : vector<1x8x8xf32> to vector<8x8xf32>
    %101 = arith.truncf %100 : vector<8x8xf32> to vector<8x8xbf16>
    %cst_52 = arith.constant dense<0.000000e+00> : vector<8x8xf32>
    %102 = tpu.matmul %94, %98, %cst_52 {dimension_numbers = #tpu.dot_dimension_numbers<[1], [0], [0], [1], [0, 0, 1, 1], [], []>} : vector<8x8xbf16>, vector<8x8xbf16>, vector<8x8xf32> -> vector<8x8xf32>
    %cst_53 = arith.constant 0.353553385 : f32
    %103 = vector.broadcast %cst_53 : f32 to vector<8x8xf32>
    %104 = arith.mulf %102, %103 : vector<8x8xf32>
    %cst_54 = arith.constant dense<0xFF800000> : vector<8xf32>
    %105 = vector.multi_reduction <maximumf>, %104, %cst_54 [1] : vector<8x8xf32> to vector<8xf32>
    %106 = vector.shape_cast %105 : vector<8xf32> to vector<8x1xf32>
    %107 = vector.broadcast %106 : vector<8x1xf32> to vector<8x8xf32>
    %108 = arith.subf %104, %107 : vector<8x8xf32>
    %109 = math.exp %108 : vector<8x8xf32>
    %cst_55 = arith.constant dense<0.000000e+00> : vector<8xf32>
    %110 = vector.multi_reduction <add>, %109, %cst_55 [1] : vector<8x8xf32> to vector<8xf32>
    %111 = vector.shape_cast %110 : vector<8xf32> to vector<8x1xf32>
    %112 = tpu.reciprocal %111 {approx = true} : vector<8x1xf32> -> vector<8x1xf32>
    %113 = vector.broadcast %112 : vector<8x1xf32> to vector<8x8xf32>
    %114 = arith.mulf %109, %113 : vector<8x8xf32>
    %115 = arith.truncf %114 : vector<8x8xf32> to vector<8x8xbf16>
    %cst_56 = arith.constant dense<0.000000e+00> : vector<8x8xf32>
    %116 = tpu.matmul %115, %101, %cst_56 {dimension_numbers = #tpu.dot_dimension_numbers<[1], [0], [0], [1], [0, 0, 1, 1], [], []>} : vector<8x8xbf16>, vector<8x8xbf16>, vector<8x8xf32> -> vector<8x8xf32>
    %117 = arith.truncf %116 : vector<8x8xf32> to vector<8x8xbf16>
    %c24_57 = arith.constant 24 : index
    %c0_58 = arith.constant 0 : index
    %118 = vector.load %arg3[%c24_57, %c0_58] : memref<32x32xbf16, #tpu.memory_space<vmem>>, vector<8x32xbf16>
    %cst_59 = arith.constant dense<0.000000e+00> : vector<8x32xf32>
    %119 = tpu.matmul %117, %118, %cst_59 {dimension_numbers = #tpu.dot_dimension_numbers<[1], [0], [0], [1], [0, 0, 1, 1], [], []>} : vector<8x8xbf16>, vector<8x32xbf16>, vector<8x32xf32> -> vector<8x32xf32>
    %120 = arith.addf %91, %119 : vector<8x32xf32>
    %c0_60 = arith.constant 0 : index
    %c0_61 = arith.constant 0 : index
    %c0_62 = arith.constant 0 : index
    %121 = vector.load %arg5[%c0_60, %c0_61, %c0_62] : memref<1x8x32xf32, #tpu.memory_space<vmem>>, vector<1x8x32xf32>
    %122 = vector.shape_cast %121 : vector<1x8x32xf32> to vector<8x32xf32>
    %123 = vector.shape_cast %120 : vector<8x32xf32> to vector<1x8x32xf32>
    tpu.vector_store %arg5[%c0_60, %c0_61, %c0_62], %123 {strides = array<i32>} : memref<1x8x32xf32, #tpu.memory_space<vmem>>, vector<1x8x32xf32>,
    return
  }
  func.func @transform_0(%arg0: i32) -> (i32, i32, i32) {
    %c0_i32 = arith.constant 0 : i32
    %c0_i32_0 = arith.constant 0 : i32
    %c0_i32_1 = arith.constant 0 : i32
    return %arg0, %c0_i32, %c0_i32_0 : i32, i32, i32
  }
  func.func @transform_1(%arg0: i32) -> (i32, i32, i32) {
    %c0_i32 = arith.constant 0 : i32
    %c0_i32_0 = arith.constant 0 : i32
    %c0_i32_1 = arith.constant 0 : i32
    return %arg0, %c0_i32, %c0_i32_0 : i32, i32, i32
  }
  func.func @transform_2(%arg0: i32) -> (i32, i32) {
    %c0_i32 = arith.constant 0 : i32
    %c0_i32_0 = arith.constant 0 : i32
    %c0_i32_1 = arith.constant 0 : i32
    return %c0_i32, %c0_i32_0 : i32, i32
  }
  func.func @transform_3(%arg0: i32) -> (i32, i32) {
    %c0_i32 = arith.constant 0 : i32
    %c0_i32_0 = arith.constant 0 : i32
    %c0_i32_1 = arith.constant 0 : i32
    return %c0_i32, %c0_i32_0 : i32, i32
  }
  func.func @transform_4(%arg0: i32) -> (i32, i32, i32) {
    %c0_i32 = arith.constant 0 : i32
    %c0_i32_0 = arith.constant 0 : i32
    %c0_i32_1 = arith.constant 0 : i32
    return %arg0, %c0_i32, %c0_i32_0 : i32, i32, i32
  }
}

module attributes {stable_mosaic.version = 11 : i64} {
  func.func @_ln_mlp_kernel(%arg0: i32, %arg1: memref<16x32xf32, #tpu.memory_space<vmem>>, %arg2: memref<1x32xf32, #tpu.memory_space<vmem>>, %arg3: memref<1x32xf32, #tpu.memory_space<vmem>>, %arg4: memref<32x128xbf16, #tpu.memory_space<vmem>>, %arg5: memref<1x128xf32, #tpu.memory_space<vmem>>, %arg6: memref<128x128xbf16, #tpu.memory_space<vmem>>, %arg7: memref<1x128xf32, #tpu.memory_space<vmem>>, %arg8: memref<16x128xf32, #tpu.memory_space<vmem>>) attributes {dimension_semantics = [#tpu.dimension_semantics<parallel>], iteration_bounds = array<i64: 1>, scalar_prefetch = 0 : i64, scratch_operands = 0 : i64, tpu.core_type = #tpu.core_type<tc>, window_params = [{transform_indices = @transform_0, window_bounds = array<i64: 16, 32>}, {pipeline_mode = #tpu.pipeline_mode<synchronous>, transform_indices = @transform_1, window_bounds = array<i64: 1, 32>}, {pipeline_mode = #tpu.pipeline_mode<synchronous>, transform_indices = @transform_2, window_bounds = array<i64: 1, 32>}, {pipeline_mode = #tpu.pipeline_mode<synchronous>, transform_indices = @transform_3, window_bounds = array<i64: 32, 128>}, {pipeline_mode = #tpu.pipeline_mode<synchronous>, transform_indices = @transform_4, window_bounds = array<i64: 1, 128>}, {pipeline_mode = #tpu.pipeline_mode<synchronous>, transform_indices = @transform_5, window_bounds = array<i64: 128, 128>}, {pipeline_mode = #tpu.pipeline_mode<synchronous>, transform_indices = @transform_6, window_bounds = array<i64: 1, 128>}, {transform_indices = @transform_7, window_bounds = array<i64: 16, 128>}]} {
    %c0 = arith.constant 0 : index
    %c0_0 = arith.constant 0 : index
    %0 = vector.load %arg1[%c0, %c0_0] : memref<16x32xf32, #tpu.memory_space<vmem>>, vector<16x32xf32>
    %c0_1 = arith.constant 0 : index
    %c0_2 = arith.constant 0 : index
    %1 = vector.load %arg2[%c0_1, %c0_2] : memref<1x32xf32, #tpu.memory_space<vmem>>, vector<1x32xf32>
    %c0_3 = arith.constant 0 : index
    %c0_4 = arith.constant 0 : index
    %2 = vector.load %arg3[%c0_3, %c0_4] : memref<1x32xf32, #tpu.memory_space<vmem>>, vector<1x32xf32>
    %cst = arith.constant dense<0.000000e+00> : vector<16xf32>
    %3 = vector.multi_reduction <add>, %0, %cst [1] : vector<16x32xf32> to vector<16xf32>
    %4 = vector.shape_cast %3 : vector<16xf32> to vector<16x1xf32>
    %cst_5 = arith.constant 3.200000e+01 : f32
    %5 = vector.broadcast %cst_5 : f32 to vector<16x1xf32>
    %6 = arith.divf %4, %5 : vector<16x1xf32>
    %7 = vector.broadcast %6 : vector<16x1xf32> to vector<16x32xf32>
    %8 = arith.subf %0, %7 : vector<16x32xf32>
    %9 = arith.mulf %8, %8 : vector<16x32xf32>
    %cst_6 = arith.constant dense<0.000000e+00> : vector<16xf32>
    %10 = vector.multi_reduction <add>, %9, %cst_6 [1] : vector<16x32xf32> to vector<16xf32>
    %11 = vector.shape_cast %10 : vector<16xf32> to vector<16x1xf32>
    %cst_7 = arith.constant 3.100000e+01 : f32
    %12 = vector.broadcast %cst_7 : f32 to vector<16x1xf32>
    %13 = arith.divf %11, %12 : vector<16x1xf32>
    %14 = vector.broadcast %1 : vector<1x32xf32> to vector<16x32xf32>
    %15 = arith.mulf %14, %8 : vector<16x32xf32>
    %16 = math.sqrt %13 : vector<16x1xf32>
    %cst_8 = arith.constant 9.99999997E-7 : f32
    %17 = vector.broadcast %cst_8 : f32 to vector<16x1xf32>
    %18 = arith.addf %16, %17 : vector<16x1xf32>
    %19 = vector.broadcast %18 : vector<16x1xf32> to vector<16x32xf32>
    %20 = arith.divf %15, %19 : vector<16x32xf32>
    %21 = vector.broadcast %2 : vector<1x32xf32> to vector<16x32xf32>
    %22 = arith.addf %20, %21 : vector<16x32xf32>
    %23 = arith.truncf %22 : vector<16x32xf32> to vector<16x32xbf16>
    %c0_9 = arith.constant 0 : index
    %c0_10 = arith.constant 0 : index
    %24 = vector.load %arg4[%c0_9, %c0_10] : memref<32x128xbf16, #tpu.memory_space<vmem>>, vector<32x128xbf16>
    %cst_11 = arith.constant dense<0.000000e+00> : vector<16x128xf32>
    %25 = tpu.matmul %23, %24, %cst_11 {dimension_numbers = #tpu.dot_dimension_numbers<[1], [0], [0], [1], [0, 0, 1, 1], [], []>} : vector<16x32xbf16>, vector<32x128xbf16>, vector<16x128xf32> -> vector<16x128xf32>
    %c0_12 = arith.constant 0 : index
    %c0_13 = arith.constant 0 : index
    %26 = vector.load %arg5[%c0_12, %c0_13] : memref<1x128xf32, #tpu.memory_space<vmem>>, vector<1x128xf32>
    %27 = vector.broadcast %26 : vector<1x128xf32> to vector<16x128xf32>
    %28 = arith.addf %25, %27 : vector<16x128xf32>
    %cst_14 = arith.constant 0.000000e+00 : f32
    %29 = vector.broadcast %cst_14 : f32 to vector<16x128xf32>
    %30 = arith.maximumf %28, %29 : vector<16x128xf32>
    %31 = arith.truncf %30 : vector<16x128xf32> to vector<16x128xbf16>
    %c0_15 = arith.constant 0 : index
    %c0_16 = arith.constant 0 : index
    %32 = vector.load %arg6[%c0_15, %c0_16] : memref<128x128xbf16, #tpu.memory_space<vmem>>, vector<128x128xbf16>
    %cst_17 = arith.constant dense<0.000000e+00> : vector<16x128xf32>
    %33 = tpu.matmul %31, %32, %cst_17 {dimension_numbers = #tpu.dot_dimension_numbers<[1], [0], [0], [1], [0, 0, 1, 1], [], []>} : vector<16x128xbf16>, vector<128x128xbf16>, vector<16x128xf32> -> vector<16x128xf32>
    %c0_18 = arith.constant 0 : index
    %c0_19 = arith.constant 0 : index
    %34 = vector.load %arg7[%c0_18, %c0_19] : memref<1x128xf32, #tpu.memory_space<vmem>>, vector<1x128xf32>
    %35 = vector.broadcast %34 : vector<1x128xf32> to vector<16x128xf32>
    %36 = arith.addf %33, %35 : vector<16x128xf32>
    %c0_20 = arith.constant 0 : index
    %c0_21 = arith.constant 0 : index
    %37 = vector.load %arg8[%c0_20, %c0_21] : memref<16x128xf32, #tpu.memory_space<vmem>>, vector<16x128xf32>
    tpu.vector_store %arg8[%c0_20, %c0_21], %36 {strides = array<i32>} : memref<16x128xf32, #tpu.memory_space<vmem>>, vector<16x128xf32>,
    return
  }
  func.func @transform_0(%arg0: i32) -> (i32, i32) {
    %c0_i32 = arith.constant 0 : i32
    %c0_i32_0 = arith.constant 0 : i32
    return %arg0, %c0_i32 : i32, i32
  }
  func.func @transform_1(%arg0: i32) -> (i32, i32) {
    %c0_i32 = arith.constant 0 : i32
    %c0_i32_0 = arith.constant 0 : i32
    %c0_i32_1 = arith.constant 0 : i32
    return %c0_i32, %c0_i32_0 : i32, i32
  }
  func.func @transform_2(%arg0: i32) -> (i32, i32) {
    %c0_i32 = arith.constant 0 : i32
    %c0_i32_0 = arith.constant 0 : i32
    %c0_i32_1 = arith.constant 0 : i32
    return %c0_i32, %c0_i32_0 : i32, i32
  }
  func.func @transform_3(%arg0: i32) -> (i32, i32) {
    %c0_i32 = arith.constant 0 : i32
    %c0_i32_0 = arith.constant 0 : i32
    %c0_i32_1 = arith.constant 0 : i32
    return %c0_i32, %c0_i32_0 : i32, i32
  }
  func.func @transform_4(%arg0: i32) -> (i32, i32) {
    %c0_i32 = arith.constant 0 : i32
    %c0_i32_0 = arith.constant 0 : i32
    %c0_i32_1 = arith.constant 0 : i32
    return %c0_i32, %c0_i32_0 : i32, i32
  }
  func.func @transform_5(%arg0: i32) -> (i32, i32) {
    %c0_i32 = arith.constant 0 : i32
    %c0_i32_0 = arith.constant 0 : i32
    %c0_i32_1 = arith.constant 0 : i32
    return %c0_i32, %c0_i32_0 : i32, i32
  }
  func.func @transform_6(%arg0: i32) -> (i32, i32) {
    %c0_i32 = arith.constant 0 : i32
    %c0_i32_0 = arith.constant 0 : i32
    %c0_i32_1 = arith.constant 0 : i32
    return %c0_i32, %c0_i32_0 : i32, i32
  }
  func.func @transform_7(%arg0: i32) -> (i32, i32) {
    %c0_i32 = arith.constant 0 : i32
    %c0_i32_0 = arith.constant 0 : i32
    return %arg0, %c0_i32 : i32, i32
  }
}

module attributes {stable_mosaic.version = 11 : i64} {
  func.func @_ln_mlp_kernel(%arg0: i32, %arg1: memref<16x32xf32, #tpu.memory_space<vmem>>, %arg2: memref<1x32xf32, #tpu.memory_space<vmem>>, %arg3: memref<1x32xf32, #tpu.memory_space<vmem>>, %arg4: memref<32x64xbf16, #tpu.memory_space<vmem>>, %arg5: memref<1x64xf32, #tpu.memory_space<vmem>>, %arg6: memref<64x32xbf16, #tpu.memory_space<vmem>>, %arg7: memref<1x32xf32, #tpu.memory_space<vmem>>, %arg8: memref<16x32xf32, #tpu.memory_space<vmem>>) attributes {dimension_semantics = [#tpu.dimension_semantics<parallel>], iteration_bounds = array<i64: 1>, scalar_prefetch = 0 : i64, scratch_operands = 0 : i64, tpu.core_type = #tpu.core_type<tc>, window_params = [{transform_indices = @transform_0, window_bounds = array<i64: 16, 32>}, {pipeline_mode = #tpu.pipeline_mode<synchronous>, transform_indices = @transform_1, window_bounds = array<i64: 1, 32>}, {pipeline_mode = #tpu.pipeline_mode<synchronous>, transform_indices = @transform_2, window_bounds = array<i64: 1, 32>}, {pipeline_mode = #tpu.pipeline_mode<synchronous>, transform_indices = @transform_3, window_bounds = array<i64: 32, 64>}, {pipeline_mode = #tpu.pipeline_mode<synchronous>, transform_indices = @transform_4, window_bounds = array<i64: 1, 64>}, {pipeline_mode = #tpu.pipeline_mode<synchronous>, transform_indices = @transform_5, window_bounds = array<i64: 64, 32>}, {pipeline_mode = #tpu.pipeline_mode<synchronous>, transform_indices = @transform_6, window_bounds = array<i64: 1, 32>}, {transform_indices = @transform_7, window_bounds = array<i64: 16, 32>}]} {
    %c0 = arith.constant 0 : index
    %c0_0 = arith.constant 0 : index
    %0 = vector.load %arg1[%c0, %c0_0] : memref<16x32xf32, #tpu.memory_space<vmem>>, vector<16x32xf32>
    %c0_1 = arith.constant 0 : index
    %c0_2 = arith.constant 0 : index
    %1 = vector.load %arg2[%c0_1, %c0_2] : memref<1x32xf32, #tpu.memory_space<vmem>>, vector<1x32xf32>
    %c0_3 = arith.constant 0 : index
    %c0_4 = arith.constant 0 : index
    %2 = vector.load %arg3[%c0_3, %c0_4] : memref<1x32xf32, #tpu.memory_space<vmem>>, vector<1x32xf32>
    %cst = arith.constant dense<0.000000e+00> : vector<16xf32>
    %3 = vector.multi_reduction <add>, %0, %cst [1] : vector<16x32xf32> to vector<16xf32>
    %4 = vector.shape_cast %3 : vector<16xf32> to vector<16x1xf32>
    %cst_5 = arith.constant 3.200000e+01 : f32
    %5 = vector.broadcast %cst_5 : f32 to vector<16x1xf32>
    %6 = arith.divf %4, %5 : vector<16x1xf32>
    %7 = vector.broadcast %6 : vector<16x1xf32> to vector<16x32xf32>
    %8 = arith.subf %0, %7 : vector<16x32xf32>
    %9 = arith.mulf %8, %8 : vector<16x32xf32>
    %cst_6 = arith.constant dense<0.000000e+00> : vector<16xf32>
    %10 = vector.multi_reduction <add>, %9, %cst_6 [1] : vector<16x32xf32> to vector<16xf32>
    %11 = vector.shape_cast %10 : vector<16xf32> to vector<16x1xf32>
    %cst_7 = arith.constant 3.100000e+01 : f32
    %12 = vector.broadcast %cst_7 : f32 to vector<16x1xf32>
    %13 = arith.divf %11, %12 : vector<16x1xf32>
    %14 = vector.broadcast %1 : vector<1x32xf32> to vector<16x32xf32>
    %15 = arith.mulf %14, %8 : vector<16x32xf32>
    %16 = math.sqrt %13 : vector<16x1xf32>
    %cst_8 = arith.constant 9.99999997E-7 : f32
    %17 = vector.broadcast %cst_8 : f32 to vector<16x1xf32>
    %18 = arith.addf %16, %17 : vector<16x1xf32>
    %19 = vector.broadcast %18 : vector<16x1xf32> to vector<16x32xf32>
    %20 = arith.divf %15, %19 : vector<16x32xf32>
    %21 = vector.broadcast %2 : vector<1x32xf32> to vector<16x32xf32>
    %22 = arith.addf %20, %21 : vector<16x32xf32>
    %23 = arith.truncf %22 : vector<16x32xf32> to vector<16x32xbf16>
    %c0_9 = arith.constant 0 : index
    %c0_10 = arith.constant 0 : index
    %24 = vector.load %arg4[%c0_9, %c0_10] : memref<32x64xbf16, #tpu.memory_space<vmem>>, vector<32x64xbf16>
    %cst_11 = arith.constant dense<0.000000e+00> : vector<16x64xf32>
    %25 = tpu.matmul %23, %24, %cst_11 {dimension_numbers = #tpu.dot_dimension_numbers<[1], [0], [0], [1], [0, 0, 1, 1], [], []>} : vector<16x32xbf16>, vector<32x64xbf16>, vector<16x64xf32> -> vector<16x64xf32>
    %c0_12 = arith.constant 0 : index
    %c0_13 = arith.constant 0 : index
    %26 = vector.load %arg5[%c0_12, %c0_13] : memref<1x64xf32, #tpu.memory_space<vmem>>, vector<1x64xf32>
    %27 = vector.broadcast %26 : vector<1x64xf32> to vector<16x64xf32>
    %28 = arith.addf %25, %27 : vector<16x64xf32>
    %cst_14 = arith.constant 0.000000e+00 : f32
    %29 = vector.broadcast %cst_14 : f32 to vector<16x64xf32>
    %30 = arith.maximumf %28, %29 : vector<16x64xf32>
    %31 = arith.truncf %30 : vector<16x64xf32> to vector<16x64xbf16>
    %c0_15 = arith.constant 0 : index
    %c0_16 = arith.constant 0 : index
    %32 = vector.load %arg6[%c0_15, %c0_16] : memref<64x32xbf16, #tpu.memory_space<vmem>>, vector<64x32xbf16>
    %cst_17 = arith.constant dense<0.000000e+00> : vector<16x32xf32>
    %33 = tpu.matmul %31, %32, %cst_17 {dimension_numbers = #tpu.dot_dimension_numbers<[1], [0], [0], [1], [0, 0, 1, 1], [], []>} : vector<16x64xbf16>, vector<64x32xbf16>, vector<16x32xf32> -> vector<16x32xf32>
    %c0_18 = arith.constant 0 : index
    %c0_19 = arith.constant 0 : index
    %34 = vector.load %arg7[%c0_18, %c0_19] : memref<1x32xf32, #tpu.memory_space<vmem>>, vector<1x32xf32>
    %35 = vector.broadcast %34 : vector<1x32xf32> to vector<16x32xf32>
    %36 = arith.addf %33, %35 : vector<16x32xf32>
    %37 = arith.addf %36, %0 : vector<16x32xf32>
    %c0_20 = arith.constant 0 : index
    %c0_21 = arith.constant 0 : index
    %38 = vector.load %arg8[%c0_20, %c0_21] : memref<16x32xf32, #tpu.memory_space<vmem>>, vector<16x32xf32>
    tpu.vector_store %arg8[%c0_20, %c0_21], %37 {strides = array<i32>} : memref<16x32xf32, #tpu.memory_space<vmem>>, vector<16x32xf32>,
    return
  }
  func.func @transform_0(%arg0: i32) -> (i32, i32) {
    %c0_i32 = arith.constant 0 : i32
    %c0_i32_0 = arith.constant 0 : i32
    return %arg0, %c0_i32 : i32, i32
  }
  func.func @transform_1(%arg0: i32) -> (i32, i32) {
    %c0_i32 = arith.constant 0 : i32
    %c0_i32_0 = arith.constant 0 : i32
    %c0_i32_1 = arith.constant 0 : i32
    return %c0_i32, %c0_i32_0 : i32, i32
  }
  func.func @transform_2(%arg0: i32) -> (i32, i32) {
    %c0_i32 = arith.constant 0 : i32
    %c0_i32_0 = arith.constant 0 : i32
    %c0_i32_1 = arith.constant 0 : i32
    return %c0_i32, %c0_i32_0 : i32, i32
  }
  func.func @transform_3(%arg0: i32) -> (i32, i32) {
    %c0_i32 = arith.constant 0 : i32
    %c0_i32_0 = arith.constant 0 : i32
    %c0_i32_1 = arith.constant 0 : i32
    return %c0_i32, %c0_i32_0 : i32, i32
  }
  func.func @transform_4(%arg0: i32) -> (i32, i32) {
    %c0_i32 = arith.constant 0 : i32
    %c0_i32_0 = arith.constant 0 : i32
    %c0_i32_1 = arith.constant 0 : i32
    return %c0_i32, %c0_i32_0 : i32, i32
  }
  func.func @transform_5(%arg0: i32) -> (i32, i32) {
    %c0_i32 = arith.constant 0 : i32
    %c0_i32_0 = arith.constant 0 : i32
    %c0_i32_1 = arith.constant 0 : i32
    return %c0_i32, %c0_i32_0 : i32, i32
  }
  func.func @transform_6(%arg0: i32) -> (i32, i32) {
    %c0_i32 = arith.constant 0 : i32
    %c0_i32_0 = arith.constant 0 : i32
    %c0_i32_1 = arith.constant 0 : i32
    return %c0_i32, %c0_i32_0 : i32, i32
  }
  func.func @transform_7(%arg0: i32) -> (i32, i32) {
    %c0_i32 = arith.constant 0 : i32
    %c0_i32_0 = arith.constant 0 : i32
    return %arg0, %c0_i32 : i32, i32
  }
}

</mosaic_0001>

<bundles_post_ra>
// kernel: te_forward.9
= control target key start
LH: loop header
LB: loop body
LE: loop exit
PB: predicated region body
PF: predicated region fallthrough
CT: control target
= control target key end

     0   :  { %vm25_vm0 = vcmask 261120   ;;  %v199_v4 = vmov 32.0   ;;  %v200_v24 = vmov 31.0   ;;  %vm164_vm15 = vcmask 785408   ;;  %s269_s0 = inlined_call_operand.vmem [shape: f32[16,32], index: 0, kind: input, shape index: {}]   ;;  %s270_s1 = inlined_call_operand.vmem [shape: f32[1,32], index: 1, kind: input, shape index: {}]   ;;  %s271_s2 = inlined_call_operand.vmem [shape: f32[1,32], index: 2, kind: input, shape index: {}]   ;;  %s272_s4 = inlined_call_operand.vmem [shape: f32[1,96], index: 4, kind: input, shape index: {}]   ;;  %s273_s3 = inlined_call_operand.vmem [shape: bf16[32,96], index: 3, kind: input, shape index: {}]   ;;  %s274_s5 = inlined_call_operand.vmem [shape: f32[16,96], index: 5, kind: output, shape index: {}]  }
   0x1   :  { %v21_v0 = vld [vmem:[%s269_s0] sm:$0xff]  ;;  %v22_v2 = vld [vmem:[%s269_s0 + $0x8] sm:$0xff]  ;;  %187 = vrcp.f32 %v199_v4 }
   0x2   :  { %v26_v1 = vsel %vm25_vm0, %v21_v0, 0.0  ;;  %v29_v3 = vsel %vm25_vm0, %v22_v2, 0.0  ;;  %v184_v12 = vld [vmem:[%s270_s1] ss:$0 sm:$0xff]  ;;  %189 = vrcp.f32 %v200_v24  ;;  %v181_v31 = vld [vmem:[%s273_s3 + $0x8] sm:$0xff] }
   0x3   :  { %27 = vadd.xlane.f32.xlu0 %v26_v1  ;;  %156 = vmatpush.bf16.msra.mxu0 %v181_v31  ;;  %v180_v33 = vld [vmem:[%s273_s3] sm:$0xff] }
   0x7   :  { %v188_v5 = vpop.eup %187  ;;  %157 = vmatpush.bf16.msra.mxu0 %v180_v33 }
   0x8   :  { %v33_v6 = vmul.f32 32.0, %v188_v5  ;;  %vm37_vm1 = vweird.f32 %v188_v5  ;;  %v190_v25 = vpop.eup %189 }
   0x9   :  { %v52_v26 = vmul.f32 31.0, %v190_v25  ;;  %vm56_vm2 = vweird.f32 %v190_v25 }
   0xa   :  { %v34_v7 = vsub.f32 1.0, %v33_v6 }
   0xb   :  { %30 = vadd.xlane.f32.xlu0 %v29_v3  ;;  %v53_v27 = vsub.f32 1.0, %v52_v26 }
   0xc   :  { %v35_v8 = vmul.f32 %v188_v5, %v34_v7 }
   0xd   :  { %v54_v28 = vmul.f32 %v190_v25, %v53_v27 }
   0xe   :  { %v36_v9 = vadd.f32 %v188_v5, %v35_v8 }
   0xf   :  { %v55_v29 = vadd.f32 %v190_v25, %v54_v28 }
  0x10   :  { %v38_v10 = vsel %vm37_vm1, %v188_v5, %v36_v9 }
  0x11   :  { %v57_v30 = vsel %vm56_vm2, %v190_v25, %v55_v29 }
  0x76   :  { %v28_v11 = vpop.xlane.xlu0 %27 }
  0x77   :  { %v39_v13 = vmul.f32 %v38_v10, %v28_v11 }
  0x79   :  { %v41_v14 = vsub.f32 %v21_v0, %v39_v13 }
  0x7b   :  { %v242_v15 = vmul.f32 %v184_v12, %v41_v14  ;;  %v43_v16 = vmul.f32 %v41_v14, %v41_v14 }
  0x7d   :  { %v45_v17 = vsel %vm25_vm0, %v43_v16, 0.0  ;;  %v185_v16 = vld [vmem:[%s271_s2] ss:$0 sm:$0xff] }
  0x7e   :  { %46 = vadd.xlane.f32.xlu1 %v45_v17  ;;  %v31_v18 = vpop.xlane.xlu0 %30 }
  0x7f   :  { %v40_v19 = vmul.f32 %v38_v10, %v31_v18 }
  0x81   :  { %v42_v20 = vsub.f32 %v22_v2, %v40_v19 }
  0x83   :  { %v245_v21 = vmul.f32 %v184_v12, %v42_v20  ;;  %v44_v22 = vmul.f32 %v42_v20, %v42_v20 }
  0x85   :  { %v48_v23 = vsel %vm25_vm0, %v44_v22, 0.0 }
  0x86   :  { %49 = vadd.xlane.f32.xlu1 %v48_v23  ;;  %v186_v23 = vld [vmem:[%s272_s4] ss:$0 sm:$0xff] }
  0xf1   :  { %v47_v32 = vpop.xlane.xlu1 %46 }
  0xf2   :  { %v58_v34 = vmul.f32 %v57_v30, %v47_v32 }
  0xf4   :  { %191 = vrsqrt.f32 %v58_v34  ;;  %vm72_vm3 = vcmp.eq.f32.partialorder %v58_v34, inf  ;;  %v75_v47 = vand.u32 2147483648, %v58_v34  ;;  %vm74_vm4 = vcmp.eq.f32.partialorder %v58_v34, 0.0 }
  0xf9   :  { %v50_v35 = vpop.xlane.xlu1 %49 }
  0xfa   :  { %v192_v36 = vpop.eup %191  ;;  %v59_v37 = vmul.f32 %v57_v30, %v50_v35 }
  0xfb   :  { %v66_v38 = vmul.f32 %v192_v36, %v58_v34 }
  0xfc   :  { %193 = vrsqrt.f32 %v59_v37  ;;  %vm84_vm5 = vcmp.eq.f32.partialorder %v59_v37, inf  ;;  %v87_v55 = vand.u32 2147483648, %v59_v37  ;;  %vm86_vm6 = vcmp.eq.f32.partialorder %v59_v37, 0.0 }
  0xfd   :  { %v67_v39 = vmul.f32 %v192_v36, %v66_v38 }
  0xff   :  { %v68_v40 = vmul.f32 0.5, %v67_v39 }
 0x101   :  { %v69_v41 = vsub.f32 1.5, %v68_v40 }
 0x102   :  { %v194_v42 = vpop.eup %193 }
 0x103   :  { %v70_v43 = vmul.f32 %v192_v36, %v69_v41  ;;  %v78_v44 = vmul.f32 %v194_v42, %v59_v37 }
 0x105   :  { %v71_v45 = vmul.f32 %v70_v43, %v58_v34  ;;  %v79_v46 = vmul.f32 %v194_v42, %v78_v44 }
 0x107   :  { %v73_v48 = vsel %vm72_vm3, %v58_v34, %v71_v45  ;;  %v80_v49 = vmul.f32 0.5, %v79_v46 }
 0x108   :  { %v76_v50 = vsel %vm74_vm4, %v75_v47, %v73_v48 }
 0x109   :  { %v81_v51 = vsub.f32 1.5, %v80_v49  ;;  %v89_v52 = vadd.f32 1e-06, %v76_v50 }
 0x10b   :  { %v82_v53 = vmul.f32 %v194_v42, %v81_v51  ;;  %195 = vrcp.f32 %v89_v52  ;;  %v102_v1 = vand.u32 2147483648, %v89_v52  ;;  %vm96_vm8 = vweird.f32 %v89_v52 }
 0x10c   :  { %v100_v2 = vand.u32 2147483647, %v89_v52 }
 0x10d   :  { %v83_v54 = vmul.f32 %v82_v53, %v59_v37  ;;  %v103_v6 = vor.u32 1.1754944e-38, %v102_v1 }
 0x10e   :  { %vm101_vm10 = vcmp.eq.f32.partialorder %v100_v2, 8.507059e+37 }
 0x10f   :  { %v85_v56 = vsel %vm84_vm5, %v59_v37, %v83_v54 }
 0x110   :  { %v88_v57 = vsel %vm86_vm6, %v87_v55, %v85_v56 }
 0x111   :  { %v196_v58 = vpop.eup %195  ;;  %v90_v59 = vadd.f32 1e-06, %v88_v57 }
 0x112   :  { %v92_v60 = vmul.f32 %v196_v58, %v89_v52  ;;  %vm97_vm7 = vweird.f32 %v196_v58 }
 0x113   :  { %197 = vrcp.f32 %v90_v59  ;;  %vm98_vm9 = vmor %vm96_vm8, %vm97_vm7  ;;  %v117_v7 = vand.u32 2147483648, %v90_v59  ;;  %v115_v9 = vand.u32 2147483647, %v90_v59  ;;  %vm111_vm12 = vweird.f32 %v90_v59 }
 0x114   :  { %v93_v61 = vsub.f32 1.0, %v92_v60 }
 0x115   :  { %v118_v12 = vor.u32 1.1754944e-38, %v117_v7  ;;  %vm116_vm14 = vcmp.eq.f32.partialorder %v115_v9, 8.507059e+37 }
 0x116   :  { %v94_v62 = vmul.f32 %v196_v58, %v93_v61 }
 0x118   :  { %v95_v63 = vadd.f32 %v196_v58, %v94_v62 }
 0x119   :  { %v198_v0 = vpop.eup %197 }
 0x11a   :  { %v107_v3 = vmul.f32 %v198_v0, %v90_v59  ;;  %v99_v4 = vsel %vm98_vm9, %v196_v58, %v95_v63  ;;  %vm112_vm11 = vweird.f32 %v198_v0 }
 0x11b   :  { %v104_v10 = vsel %vm101_vm10, %v103_v6, %v99_v4  ;;  %vm113_vm13 = vmor %vm111_vm12, %vm112_vm11 }
 0x11c   :  { %v108_v5 = vsub.f32 1.0, %v107_v3  ;;  %v105_v13 = vmul.f32 %v104_v10, %v242_v15 }
 0x11e   :  { %v109_v8 = vmul.f32 %v198_v0, %v108_v5  ;;  %v124_v19 = vadd.f32 %v185_v16, %v105_v13 }
 0x120   :  { %v110_v11 = vadd.f32 %v198_v0, %v109_v8 }
 0x122   :  { %v114_v14 = vsel %vm113_vm13, %v198_v0, %v110_v11 }
 0x123   :  { %v119_v17 = vsel %vm116_vm14, %v118_v12, %v114_v14 }
 0x124   :  { %v120_v18 = vmul.f32 %v119_v17, %v245_v21 }
 0x126   :  { %v125_v20 = vadd.f32 %v185_v16, %v120_v18 }
 0x128   :  { %v126_v22 = vpack.c.bf16 %v125_v20, %v124_v19 }
 0x12a   :  { %179 = vmatmul.msk.bf16.vlgmr.msra.gmra.mxu0 %vm25_vm0, %v126_v22 }
 0x1a7   :  { %v159_v24 = vpop.f32.mrf.mxu0 }
 0x1a8   :  { %v160_v15 = vadd.f32 %v186_v23, %v159_v24 }
 0x1aa   :  { %165 = vst.msk [vmem:[%s274_s5] sm:$0xff] %vm164_vm15, %v160_v15 }
 0x1af   :  { %v161_v25 = vpop.f32.mrf.mxu0 }
 0x1b0   :  { %v162_v26 = vadd.f32 %v186_v23, %v161_v25 }
 0x1b2   :  { %166 = vst.msk [vmem:[%s274_s5 + $0x8] sm:$0xff] %vm164_vm15, %v162_v26 }

// kernel: te_forward.8
= control target key start
LH: loop header
LB: loop body
LE: loop exit
PB: predicated region body
PF: predicated region fallthrough
CT: control target
= control target key end

     0   :  { %s449_s15 = smov 0   ;;  %s451_s16 = smov 0   ;;  %s488_s0 = inlined_call_operand.vmem [shape: f32[2,8,4], index: 0, kind: input, shape index: {}]   ;;  %s489_s1 = inlined_call_operand.vmem [shape: f32[5000,32], index: 1, kind: input, shape index: {}]   ;;  %s490_s2 = inlined_call_operand.vmem [shape: bf16[4,32], index: 2, kind: input, shape index: {}]   ;;  %s491_s3 = inlined_call_operand.vmem [shape: f32[1,32], index: 3, kind: input, shape index: {}]   ;;  %s492_s4 = inlined_call_operand.vmem [shape: f32[2,8,32], index: 4, kind: output, shape index: {}]  }
   0x1   :  { %s453_s17 = smov 0  }
   0x2 LB: > { %s26_s18 = sadd.s32 1, %s418_s16  ;;  %p369_p0 = scmp.ge.s32.totalorder %s422_s17, 1  ;;  %s422_s17 = sphi %s453_s17, %s14_s17   ;;  %s418_s16 = sphi %s451_s16, %s494_s16   ;;  %s414_s15 = sphi %s449_s15, %s493_s15  }
   0x3   : > { %p28_p1 = scmp.ge.s32.totalorder %s26_s18, 2  ;;  %p189_p2 = scmp.lt.s32.totalorder %s422_s17, 3 }
   0x5   : > { %s496_s18 = smov (%p28_p1, %s26_s18), 0  ;;  %p190_p3 = pnand %p369_p0, %p189_p2 }
   0x6   : > { %p223_p4 = scmp.lt.s32.totalorder (!%p190_p3), %s414_s15, 1 }
   0x7   : > { %193 = sbr.rel (%p190_p3) target bundleno = 152 (0x98), region = 36 }
   0xc   : > { %v244_v0 = vld [vmem:[%s490_s2] sm:$0x3]  ;;  %vm253_vm0 = vcmask 1041408   ;;  %s498_s15 = smov (!%p223_p4, %s414_s15), 1  ;;  %vm249_vm1 = vcmask 31744   ;;  %vm272_vm2 = vcmask 261120  }
   0xd   : > { %v255_v1 = vsel %vm253_vm0, %v244_v0, 0  ;;  %s370_s21 = sshll.u32 %s498_s15, 3  ;;  %v399_v4 = vld [vmem:[%s491_s3] ss:$0 sm:$0xff] }
   0xe   : > { %264 = vmatpush.bf16.msra.mxu0 %v255_v1  ;;  %s229_s24 = scalar_lea.vmem %s488_s0, %s370_s21  ;;  %v270_v6 = vld [vmem:[%s489_s1] sm:$0xff]  ;;  %s240_s5 = scalar_lea.vmem %s492_s4, %s370_s21 }
   0xf   : > { %v242_v2 = vld [vmem:[%s229_s24] sm:$0xff] }
  0x10   : > { %v243_v3 = vpack.c.bf16 %v242_v2, %v242_v2 }
  0x12   : > { %372 = vmatmul.msk.bf16.vlgmr.msra.gmra.mxu0 %vm249_vm1, %v243_v3 }
  0x8f   : > { %v266_v5 = vpop.f32.mrf.mxu0 }
  0x90   : > { %v267_v7 = vadd.f32 %v399_v4, %v266_v5 }
  0x92   : > { %v271_v8 = vadd.f32 %v270_v6, %v267_v7 }
  0x94   : > { %273 = vst.msk [vmem:[%s240_s5] sm:$0xff] %vm272_vm2, %v271_v8 }
  0x97   : > { %v268_v9 = vpop.f32.mrf.mxu0 }
  0x98 PF: > { %s14_s17 = sadd.s32 1, %s422_s17   ;;  %s493_s15 = smov %s418_s16 }
  0x99   : > { %p11_p5 = scmp.ge.s32.totalorder %s14_s17, 4   ;;  %s494_s16 = smov %s496_s18 }
  0x9b   :  { %13 = sbr.rel (!%p11_p5) target bundleno = 2 (0x2), region = 69 }

// kernel: te_forward.10
= control target key start
LH: loop header
LB: loop body
LE: loop exit
PB: predicated region body
PF: predicated region fallthrough
CT: control target
= control target key end

     0   :  { %s850_s15 = smov 0   ;;  %s935_s0 = inlined_call_operand.vmem [shape: f32[2,8,96], index: 0, kind: input, shape index: {}]   ;;  %s936_s1 = inlined_call_operand.vmem [shape: f32[2,8,32], index: 1, kind: input, shape index: {}, may-alias: {1,4}]   ;;  %s937_s2 = inlined_call_operand.vmem [shape: bf16[32,32], index: 2, kind: input, shape index: {}]   ;;  %s938_s3 = inlined_call_operand.vmem [shape: f32[1,32], index: 3, kind: input, shape index: {}]   ;;  %s939_s4 = inlined_call_operand.vmem [shape: f32[2,8,32], index: 4, kind: output, shape index: {}, may-alias: {1,4}]  }
   0x1 LB: > { %s740_s16 = sadd.s32 4294967295, %s812_s15   ;;  %p744_p0 = scmp.ge.s32.totalorder %s812_s15, 1  ;;  %s812_s15 = sphi %s850_s15, %s14_s15  }
   0x2   : > { %p170_p1 = scmp.lt.s32.totalorder %s812_s15, 3 }
   0x4   : > { %p171_p2 = pnand %p744_p0, %p170_p1 }
   0x5   : > { %p198_p3 = scmp.lt.s32.totalorder (!%p171_p2), %s740_s16, 1  ;;  %s814_s21 = smov (!%p171_p2), 88  }
   0x6   : > { %174 = sbr.rel (%p171_p2) target bundleno = 1553 (0x611), region = 36  ;;  %s815_s22 = smov (!%p171_p2), 120  }
   0x7   : > { %s816_s23 = smov (!%p171_p2), 96   ;;  %s817_s24 = smov (!%p171_p2), 64  }
   0x8   : > { %s818_s25 = smov (!%p171_p2), 56   ;;  %s819_s26 = smov (!%p171_p2), 80  }
   0x9   : > { %s820_s27 = smov (!%p171_p2), 72   ;;  %s821_s28 = smov (!%p171_p2), 112  }
   0xa   : > { %s822_s29 = smov (!%p171_p2), 104   ;;  %s823_s13 = smov (!%p171_p2), 40  }
   0xb   : > { %s941_s16 = smov (!%p198_p3, %s740_s16), 1  ;;  %vm260_vm0 = vcmask 1043456   ;;  %vm256_vm1 = vcmask 64512   ;;  %v313_v44 = vld [vmem:[%s937_s2] sm:$0xf]  ;;  %s824_s14 = smov 48  }
   0xc   : > { %s858_s17 = sshll.u32 %s941_s16, 3  ;;  %v318_v45 = vsel %vm260_vm0, %v313_v44, 0  ;;  %v426_v46 = vld [vmem:[%s937_s2 + $0x4] sm:$0xf]  ;;  %v789_v63 = vld [vmem:[%s938_s3] ss:$0 sm:$0xff] }
   0xd   : > { %s201_s20 = scalar_lea.vmem %s935_s0, %s858_s17  ;;  %327 = vmatpush.bf16.msra.mxu2 %v318_v45  ;;  %v431_v47 = vsel %vm260_vm0, %v426_v46, 0  ;;  %s205_s10 = scalar_lea.vmem %s936_s1, %s858_s17  ;;  %vm673_vm2 = vcmask 261120  }
   0xe   : > { %v217_v0 = vld [vmem:[%s201_s20] sm:$0xff] }
   0xf   : > { %334 = vrot.lane.b32.xlu0 %v217_v0, %s814_s21  ;;  %v864_v1 = vpack.c.bf16 %v217_v0, %v217_v0 }
  0x11   : > { %370 = vrot.lane.b32.xlu1 %v864_v1, %s815_s22 }
  0x17   : > { %220 = vrot.lane.b32.xlu0 %v217_v0, %s816_s23  ;;  %s209_s23 = scalar_lea.vmem %s939_s4, %s858_s17 }
  0x81   : > { %v335_v2 = vpop.permute.xlu0 %334 }
  0x82   : > { %337 = vxpose.xlu1.b32.start.end [1/1] (short) (narrow) %v335_v2, 8 }
  0x83   : > { %v371_v4 = vpop.permute.xlu1 %370 }
  0x89   : > { %v221_v3 = vpop.permute.xlu0 %220 }
  0x8a   : > { %223 = vxpose.xlu2.b32.start.end [1/1] (short) (narrow) %v221_v3, 8 }
 0x123   : > { %v239_v5 = vpop.trf.xlu2 }
 0x124   : > { %v255_v6 = vpack.c.bf16 %v239_v5, %v239_v5 }
 0x126   : > { %v353_v7 = vpop.trf.xlu1  ;;  %v262_v8 = vsel %vm260_vm0, %v255_v6, 0 }
 0x127   : > { %v369_v9 = vpack.c.bf16 %v353_v7, %v353_v7  ;;  %271 = vmatpush.bf16.msra.mxu0 %v262_v8 }
 0x129   : > { %v376_v10 = vsel %vm260_vm0, %v369_v9, 0 }
 0x12a   : > { %748 = vmatmul.msk.bf16.vlgmr.msra.gmra.mxu0 %vm256_vm1, %v864_v1  ;;  %385 = vmatpush.bf16.msra.mxu3 %v376_v10 }
 0x12d   : > { %751 = vmatmul.msk.bf16.vlgmr.msra.gmra.mxu3 %vm256_vm1, %v371_v4 }
 0x1a7   : > { %v273_v11 = vpop.f32.mrf.mxu0 }
 0x1a8   : > { %v277_v12 = vmul.f32 0.35355338, %v273_v11 }
 0x1aa   : > { %v278_v13 = vsel %vm256_vm1, %v277_v12, -inf }
 0x1ab   : > { %279 = vmax.xlane.f32.xlu2 %v278_v13 }
 0x1af   : > { %v275_v14 = vpop.f32.mrf.mxu0 }
 0x1b0   : > { %v387_v15 = vpop.f32.mrf.mxu3 }
 0x1b1   : > { %v391_v16 = vmul.f32 0.35355338, %v387_v15 }
 0x1b3   : > { %v392_v17 = vsel %vm256_vm1, %v391_v16, -inf }
 0x1b4   : > { %393 = vmax.xlane.f32.xlu0 %v392_v17 }
 0x1b8   : > { %v389_v18 = vpop.f32.mrf.mxu3 }
 0x21e   : > { %v280_v19 = vpop.xlane.xlu2 %279 }
 0x21f   : > { %v281_v20 = vsub.f32 %v277_v12, %v280_v19 }
 0x221   : > { %v282_v21 = vmul.f32 1.442695, %v281_v20 }
 0x223   : > { %790 = vpow2.f32 %v282_v21 }
 0x227   : > { %v394_v22 = vpop.xlane.xlu0 %393 }
 0x228   : > { %v395_v23 = vsub.f32 %v391_v16, %v394_v22 }
 0x229   : > { %v791_v24 = vpop.eup %790 }
 0x22a   : > { %v396_v25 = vmul.f32 1.442695, %v395_v23  ;;  %v284_v26 = vsel %vm256_vm1, %v791_v24, 0.0 }
 0x22b   : > { %285 = vadd.xlane.f32.xlu0 %v284_v26 }
 0x22c   : > { %792 = vpow2.f32 %v396_v25 }
 0x232   : > { %v793_v27 = vpop.eup %792 }
 0x233   : > { %v398_v28 = vsel %vm256_vm1, %v793_v27, 0.0 }
 0x234   : > { %399 = vadd.xlane.f32.xlu1 %v398_v28 }
 0x23f   : > { %291 = vrot.lane.b32.xlu0 %v864_v1, %s817_s24 }
 0x247   : > { %404 = vrot.lane.b32.xlu0 %v864_v1, %s818_s25 }
 0x24f   : > { %447 = vrot.lane.b32.xlu0 %v217_v0, %s819_s26 }
 0x257   : > { %560 = vrot.lane.b32.xlu0 %v217_v0, %s820_s27  ;;  %v211_v0 = vld [vmem:[%s205_s10] sm:$0xff] }
 0x258   : > { %v216_v2 = vadd.f32 %v789_v63, %v211_v0 }
 0x25f   : > { %483 = vrot.lane.b32.xlu0 %v864_v1, %s821_s28 }
 0x267   : > { %596 = vrot.lane.b32.xlu0 %v864_v1, %s822_s29 }
 0x29e   : > { %v286_v29 = vpop.xlane.xlu0 %285 }
 0x29f   : > { %794 = vrcp.f32 %v286_v29 }
 0x2a5   : > { %v795_v31 = vpop.eup %794 }
 0x2a6   : > { %v288_v32 = vmul.f32 %v795_v31, %v791_v24 }
 0x2a7   : > { %v400_v30 = vpop.xlane.xlu1 %399 }
 0x2a8   : > { %796 = vrcp.f32 %v400_v30  ;;  %v289_v35 = vpack.c.bf16 %v288_v32, %v288_v32 }
 0x2ae   : > { %v797_v36 = vpop.eup %796 }
 0x2af   : > { %v402_v37 = vmul.f32 %v797_v36, %v793_v27 }
 0x2b1   : > { %v292_v33 = vpop.permute.xlu0 %291  ;;  %v403_v40 = vpack.c.bf16 %v402_v37, %v402_v37 }
 0x2b2   : > { %v297_v34 = vsel %vm260_vm0, %v292_v33, 0 }
 0x2b3   : > { %306 = vmatpush.bf16.msra.mxu1 %v297_v34 }
 0x2b6   : > { %749 = vmatmul.msk.bf16.vlgmr.msra.gmra.mxu1 %vm256_vm1, %v289_v35 }
 0x2b7   : > { %440 = vmatpush.bf16.msrb.mxu1 %v431_v47 }
 0x2b9   : > { %v405_v38 = vpop.permute.xlu0 %404 }
 0x2ba   : > { %v410_v39 = vsel %vm260_vm0, %v405_v38, 0  ;;  %v652_v38 = vld [vmem:[%s937_s2 + $0xc] sm:$0xf] }
 0x2bb   : > { %419 = vmatpush.bf16.msrb.mxu0 %v410_v39  ;;  %v657_v39 = vsel %vm260_vm0, %v652_v38, 0 }
 0x2be   : > { %752 = vmatmul.msk.bf16.vlgmr.msrb.gmra.mxu0 %vm256_vm1, %v403_v40  ;;  %v539_v40 = vld [vmem:[%s937_s2 + $0x8] sm:$0xf] }
 0x2c1   : > { %v448_v41 = vpop.permute.xlu0 %447 }
 0x2c9   : > { %v561_v42 = vpop.permute.xlu0 %560 }
 0x2ca   : > { %v782_v43 = vpack.i.bf16 %v561_v42, %v448_v41  ;;  %v544_v41 = vsel %vm260_vm0, %v539_v40, 0 }
 0x2cb   : > { %553 = vmatpush.bf16.msra.mxu0 %v544_v41 }
 0x2cc   : > { %783 = vxpose.xlu2.b32.start.end [1/1] (short) (narrow) %v782_v43, 8 }
 0x2d1   : > { %v484_v54 = vpop.permute.xlu0 %483 }
 0x2d9   : > { %v597_v62 = vpop.permute.xlu0 %596 }
 0x333   : > { %v308_v48 = vpop.f32.mrf.mxu1 }
 0x334   : > { %v312_v49 = vpack.c.bf16 %v308_v48, %v308_v48 }
 0x336   : > { %750 = vmatmul.msk.bf16.vlgmr.msra.gmra.mxu2 %vm256_vm1, %v312_v49 }
 0x33b   : > { %v310_v50 = vpop.f32.mrf.mxu1  ;;  %v421_v51 = vpop.f32.mrf.mxu0 }
 0x33c   : > { %v425_v52 = vpack.c.bf16 %v421_v51, %v421_v51 }
 0x33e   : > { %753 = vmatmul.msk.bf16.vlgmr.msrb.gmra.mxu1 %vm256_vm1, %v425_v52 }
 0x343   : > { %v423_v53 = vpop.f32.mrf.mxu0 }
 0x365   : > { %v784_v55 = vpop.trf.xlu2 }
 0x366   : > { %v788_v56 = vunpack.i.h.bf16 %v784_v55  ;;  %v785_v57 = vunpack.i.l.bf16 %v784_v55 }
 0x368   : > { %v482_v58 = vpack.c.bf16 %v785_v57, %v785_v57  ;;  %v595_v59 = vpack.c.bf16 %v788_v56, %v788_v56 }
 0x36a   : > { %v489_v60 = vsel %vm260_vm0, %v482_v58, 0  ;;  %v602_v61 = vsel %vm260_vm0, %v595_v59, 0 }
 0x36b   : > { %498 = vmatpush.bf16.msrb.mxu2 %v489_v60  ;;  %611 = vmatpush.bf16.msra.mxu1 %v602_v61 }
 0x36e   : > { %754 = vmatmul.msk.bf16.vlgmr.msrb.gmra.mxu2 %vm256_vm1, %v484_v54  ;;  %757 = vmatmul.msk.bf16.vlgmr.msra.gmra.mxu1 %vm256_vm1, %v597_v62 }
 0x3b9   : > { %v329_v3 = vpop.f32.mrf.mxu2 }
 0x3ba   : > { %v333_v4 = vadd.f32 %v329_v3, %v216_v2 }
 0x3bb   : > { %v442_v5 = vpop.f32.mrf.mxu1 }
 0x3bc   : > { %v905_v6 = vadd.f32 %v442_v5, %v333_v4 }
 0x3c1   : > { %v331_v7 = vpop.f32.mrf.mxu2 }
 0x3c3   : > { %v444_v8 = vpop.f32.mrf.mxu1 }
 0x3eb   : > { %v613_v9 = vpop.f32.mrf.mxu1 }
 0x3ec   : > { %v617_v10 = vmul.f32 0.35355338, %v613_v9 }
 0x3ee   : > { %v618_v11 = vsel %vm256_vm1, %v617_v10, -inf }
 0x3ef   : > { %619 = vmax.xlane.f32.xlu0 %v618_v11 }
 0x3f1   : > { %v500_v12 = vpop.f32.mrf.mxu2 }
 0x3f2   : > { %v504_v13 = vmul.f32 0.35355338, %v500_v12 }
 0x3f3   : > { %v615_v14 = vpop.f32.mrf.mxu1 }
 0x3f4   : > { %v505_v15 = vsel %vm256_vm1, %v504_v13, -inf }
 0x3f5   : > { %506 = vmax.xlane.f32.xlu1 %v505_v15 }
 0x3f9   : > { %v502_v16 = vpop.f32.mrf.mxu2 }
 0x403   : > { %630 = vrot.lane.b32.xlu0 %v864_v1, %s823_s13 }
 0x462   : > { %v620_v17 = vpop.xlane.xlu0 %619 }
 0x463   : > { %v621_v18 = vsub.f32 %v617_v10, %v620_v17 }
 0x465   : > { %v622_v19 = vmul.f32 1.442695, %v621_v18 }
 0x467   : > { %798 = vpow2.f32 %v622_v19 }
 0x468   : > { %v507_v20 = vpop.xlane.xlu1 %506 }
 0x469   : > { %v508_v21 = vsub.f32 %v504_v13, %v507_v20 }
 0x46b   : > { %v509_v22 = vmul.f32 1.442695, %v508_v21 }
 0x46d   : > { %v799_v23 = vpop.eup %798  ;;  %800 = vpow2.f32 %v509_v22 }
 0x46e   : > { %v624_v24 = vsel %vm256_vm1, %v799_v23, 0.0 }
 0x46f   : > { %625 = vadd.xlane.f32.xlu2 %v624_v24 }
 0x473   : > { %v801_v25 = vpop.eup %800 }
 0x474   : > { %v511_v26 = vsel %vm256_vm1, %v801_v25, 0.0 }
 0x475   : > { %512 = vadd.xlane.f32.xlu1 %v511_v26  ;;  %v631_v27 = vpop.permute.xlu0 %630 }
 0x476   : > { %v636_v28 = vsel %vm260_vm0, %v631_v27, 0 }
 0x477   : > { %645 = vmatpush.bf16.msra.mxu2 %v636_v28 }
 0x48e   : > { %517 = vrot.lane.b32.xlu1 %v864_v1, %s824_s14 }
 0x4e2   : > { %v626_v29 = vpop.xlane.xlu2 %625 }
 0x4e3   : > { %802 = vrcp.f32 %v626_v29 }
 0x4e8   : > { %v513_v33 = vpop.xlane.xlu1 %512 }
 0x4e9   : > { %v803_v30 = vpop.eup %802  ;;  %804 = vrcp.f32 %v513_v33 }
 0x4ea   : > { %v628_v31 = vmul.f32 %v803_v30, %v799_v23 }
 0x4ec   : > { %v629_v32 = vpack.c.bf16 %v628_v31, %v628_v31 }
 0x4ee   : > { %758 = vmatmul.msk.bf16.vlgmr.msra.gmra.mxu2 %vm256_vm1, %v629_v32 }
 0x4ef   : > { %v805_v34 = vpop.eup %804 }
 0x4f0   : > { %v515_v35 = vmul.f32 %v805_v34, %v801_v25 }
 0x4f2   : > { %v516_v1 = vpack.c.bf16 %v515_v35, %v515_v35 }
 0x500   : > { %v518_v36 = vpop.permute.xlu1 %517 }
 0x501   : > { %v523_v37 = vsel %vm260_vm0, %v518_v36, 0 }
 0x502   : > { %532 = vmatpush.bf16.msrb.mxu3 %v523_v37 }
 0x505   : > { %755 = vmatmul.msk.bf16.vlgmr.msrb.gmra.mxu3 %vm256_vm1, %v516_v1 }
 0x506   : > { %666 = vmatpush.bf16.msra.mxu3 %v657_v39 }
 0x571   : > { %v647_v42 = vpop.f32.mrf.mxu2 }
 0x572   : > { %v651_v43 = vpack.c.bf16 %v647_v42, %v647_v42 }
 0x574   : > { %759 = vmatmul.msk.bf16.vlgmr.msra.gmra.mxu3 %vm256_vm1, %v651_v43 }
 0x579   : > { %v649_v44 = vpop.f32.mrf.mxu2 }
 0x588   : > { %v534_v45 = vpop.f32.mrf.mxu3 }
 0x589   : > { %v538_v46 = vpack.c.bf16 %v534_v45, %v534_v45 }
 0x58b   : > { %756 = vmatmul.msk.bf16.vlgmr.msra.gmra.mxu0 %vm256_vm1, %v538_v46 }
 0x590   : > { %v536_v47 = vpop.f32.mrf.mxu3 }
 0x5f7   : > { %v668_v48 = vpop.f32.mrf.mxu3 }
 0x5ff   : > { %v670_v49 = vpop.f32.mrf.mxu3 }
 0x608   : > { %v555_v50 = vpop.f32.mrf.mxu0 }
 0x609   : > { %v559_v51 = vadd.f32 %v555_v50, %v905_v6 }
 0x60b   : > { %v672_v52 = vadd.f32 %v668_v48, %v559_v51 }
 0x60d   : > { %674 = vst.msk [vmem:[%s209_s23] sm:$0xff] %vm673_vm2, %v672_v52 }
 0x610   : > { %v557_v53 = vpop.f32.mrf.mxu0 }
 0x611 PF: > { %s14_s15 = sadd.s32 1, %s812_s15  }
 0x612   : > { %p11_p4 = scmp.ge.s32.totalorder %s14_s15, 4  }
 0x614   :  { %13 = sbr.rel (!%p11_p4) target bundleno = 1 (0x1), region = 69 }

// kernel: te_forward.15
= control target key start
LH: loop header
LB: loop body
LE: loop exit
PB: predicated region body
PF: predicated region fallthrough
CT: control target
= control target key end

     0   :  { %vm31_vm0 = vcmask 261120   ;;  %v330_v4 = vmov 32.0   ;;  %v331_v24 = vmov 31.0   ;;  %s437_s0 = inlined_call_operand.vmem [shape: f32[16,32], index: 0, kind: input, shape index: {}]   ;;  %s438_s1 = inlined_call_operand.vmem [shape: f32[1,32], index: 1, kind: input, shape index: {}]   ;;  %s439_s2 = inlined_call_operand.vmem [shape: f32[1,32], index: 2, kind: input, shape index: {}]   ;;  %s440_s4 = inlined_call_operand.vmem [shape: f32[1,128], index: 4, kind: input, shape index: {}]   ;;  %s441_s3 = inlined_call_operand.vmem [shape: bf16[32,128], index: 3, kind: input, shape index: {}]   ;;  %s442_s5 = inlined_call_operand.vmem [shape: bf16[128,128], index: 5, kind: input, shape index: {}]   ;;  %s443_s6 = inlined_call_operand.vmem [shape: f32[1,128], index: 6, kind: input, shape index: {}]   ;;  %s444_s7 = inlined_call_operand.vmem [shape: f32[16,128], index: 7, kind: output, shape index: {}]  }
   0x1   :  { %v27_v0 = vld [vmem:[%s437_s0] sm:$0xff]  ;;  %v28_v2 = vld [vmem:[%s437_s0 + $0x8] sm:$0xff]  ;;  %318 = vrcp.f32 %v330_v4  ;;  %v311_v53 = vld [vmem:[%s442_s5 + $0x38] sm:$0xff] }
   0x2   :  { %v32_v1 = vsel %vm31_vm0, %v27_v0, 0.0  ;;  %v35_v3 = vsel %vm31_vm0, %v28_v2, 0.0  ;;  %v314_v12 = vld [vmem:[%s438_s1] ss:$0 sm:$0xff]  ;;  %320 = vrcp.f32 %v331_v24  ;;  %v303_v31 = vld [vmem:[%s441_s3 + $0x8] sm:$0xff]  ;;  %241 = vmatpush.bf16.msra.mxu1 %v311_v53  ;;  %v310_v55 = vld [vmem:[%s442_s5 + $0x30] sm:$0xff] }
   0x3   :  { %33 = vadd.xlane.f32.xlu0 %v32_v1  ;;  %162 = vmatpush.bf16.msra.mxu0 %v303_v31  ;;  %v302_v33 = vld [vmem:[%s441_s3] sm:$0xff]  ;;  %v309_v60 = vld [vmem:[%s442_s5 + $0x28] sm:$0xff] }
   0x4   :  { %v308_v1 = vld [vmem:[%s442_s5 + $0x20] sm:$0xff] }
   0x6   :  { %242 = vmatpush.bf16.msra.mxu1 %v310_v55 }
   0x7   :  { %v319_v5 = vpop.eup %318  ;;  %163 = vmatpush.bf16.msra.mxu0 %v302_v33 }
   0x8   :  { %v39_v6 = vmul.f32 32.0, %v319_v5  ;;  %vm43_vm1 = vweird.f32 %v319_v5  ;;  %v321_v25 = vpop.eup %320 }
   0x9   :  { %v58_v26 = vmul.f32 31.0, %v321_v25  ;;  %vm62_vm2 = vweird.f32 %v321_v25 }
   0xa   :  { %v40_v7 = vsub.f32 1.0, %v39_v6  ;;  %243 = vmatpush.bf16.msra.mxu1 %v309_v60 }
   0xb   :  { %36 = vadd.xlane.f32.xlu0 %v35_v3  ;;  %v59_v27 = vsub.f32 1.0, %v58_v26 }
   0xc   :  { %v41_v8 = vmul.f32 %v319_v5, %v40_v7 }
   0xd   :  { %v60_v28 = vmul.f32 %v321_v25, %v59_v27  ;;  %v307_v27 = vld [vmem:[%s442_s5 + $0x18] sm:$0xff] }
   0xe   :  { %v42_v9 = vadd.f32 %v319_v5, %v41_v8  ;;  %244 = vmatpush.bf16.msra.mxu1 %v308_v1 }
   0xf   :  { %v61_v29 = vadd.f32 %v321_v25, %v60_v28  ;;  %v305_v28 = vld [vmem:[%s442_s5 + $0x8] sm:$0xff] }
  0x10   :  { %v44_v10 = vsel %vm43_vm1, %v319_v5, %v42_v9 }
  0x11   :  { %v63_v30 = vsel %vm62_vm2, %v321_v25, %v61_v29 }
  0x12   :  { %245 = vmatpush.bf16.msra.mxu1 %v307_v27 }
  0x76   :  { %v34_v11 = vpop.xlane.xlu0 %33 }
  0x77   :  { %v45_v13 = vmul.f32 %v44_v10, %v34_v11 }
  0x79   :  { %v47_v14 = vsub.f32 %v27_v0, %v45_v13 }
  0x7b   :  { %v383_v15 = vmul.f32 %v314_v12, %v47_v14  ;;  %v49_v16 = vmul.f32 %v47_v14, %v47_v14 }
  0x7d   :  { %v51_v17 = vsel %vm31_vm0, %v49_v16, 0.0 }
  0x7e   :  { %52 = vadd.xlane.f32.xlu1 %v51_v17  ;;  %v37_v18 = vpop.xlane.xlu0 %36 }
  0x7f   :  { %v46_v19 = vmul.f32 %v44_v10, %v37_v18 }
  0x81   :  { %v48_v20 = vsub.f32 %v28_v2, %v46_v19 }
  0x83   :  { %v386_v21 = vmul.f32 %v314_v12, %v48_v20  ;;  %v50_v22 = vmul.f32 %v48_v20, %v48_v20  ;;  %v315_v20 = vld [vmem:[%s439_s2] ss:$0 sm:$0xff] }
  0x85   :  { %v54_v23 = vsel %vm31_vm0, %v50_v22, 0.0 }
  0x86   :  { %55 = vadd.xlane.f32.xlu1 %v54_v23 }
  0xf1   :  { %v53_v32 = vpop.xlane.xlu1 %52 }
  0xf2   :  { %v64_v34 = vmul.f32 %v63_v30, %v53_v32 }
  0xf4   :  { %322 = vrsqrt.f32 %v64_v34  ;;  %vm78_vm3 = vcmp.eq.f32.partialorder %v64_v34, inf  ;;  %v81_v47 = vand.u32 2147483648, %v64_v34  ;;  %vm80_vm4 = vcmp.eq.f32.partialorder %v64_v34, 0.0 }
  0xf9   :  { %v56_v35 = vpop.xlane.xlu1 %55 }
  0xfa   :  { %v323_v36 = vpop.eup %322  ;;  %v65_v37 = vmul.f32 %v63_v30, %v56_v35  ;;  %v316_v30 = vld [vmem:[%s440_s4] ss:$0 sm:$0xff] }
  0xfb   :  { %v72_v38 = vmul.f32 %v323_v36, %v64_v34 }
  0xfc   :  { %324 = vrsqrt.f32 %v65_v37  ;;  %vm90_vm5 = vcmp.eq.f32.partialorder %v65_v37, inf  ;;  %v93_v57 = vand.u32 2147483648, %v65_v37  ;;  %vm92_vm6 = vcmp.eq.f32.partialorder %v65_v37, 0.0 }
  0xfd   :  { %v73_v39 = vmul.f32 %v323_v36, %v72_v38 }
  0xff   :  { %v74_v40 = vmul.f32 0.5, %v73_v39 }
 0x101   :  { %v75_v41 = vsub.f32 1.5, %v74_v40 }
 0x102   :  { %v325_v42 = vpop.eup %324 }
 0x103   :  { %v76_v43 = vmul.f32 %v323_v36, %v75_v41  ;;  %v84_v44 = vmul.f32 %v325_v42, %v65_v37 }
 0x105   :  { %v77_v45 = vmul.f32 %v76_v43, %v64_v34  ;;  %v85_v46 = vmul.f32 %v325_v42, %v84_v44 }
 0x107   :  { %v79_v48 = vsel %vm78_vm3, %v64_v34, %v77_v45  ;;  %v86_v49 = vmul.f32 0.5, %v85_v46 }
 0x108   :  { %v82_v50 = vsel %vm80_vm4, %v81_v47, %v79_v48 }
 0x109   :  { %v87_v51 = vsub.f32 1.5, %v86_v49  ;;  %v95_v52 = vadd.f32 1e-06, %v82_v50 }
 0x10b   :  { %v88_v54 = vmul.f32 %v325_v42, %v87_v51  ;;  %326 = vrcp.f32 %v95_v52  ;;  %v108_v5 = vand.u32 2147483648, %v95_v52  ;;  %vm102_vm8 = vweird.f32 %v95_v52 }
 0x10c   :  { %v106_v6 = vand.u32 2147483647, %v95_v52 }
 0x10d   :  { %v89_v56 = vmul.f32 %v88_v54, %v65_v37  ;;  %v109_v10 = vor.u32 1.1754944e-38, %v108_v5 }
 0x10e   :  { %vm107_vm10 = vcmp.eq.f32.partialorder %v106_v6, 8.507059e+37 }
 0x10f   :  { %v91_v58 = vsel %vm90_vm5, %v65_v37, %v89_v56  ;;  %v317_v37 = vld [vmem:[%s443_s6] ss:$0 sm:$0xff] }
 0x110   :  { %v94_v59 = vsel %vm92_vm6, %v93_v57, %v91_v58 }
 0x111   :  { %v327_v61 = vpop.eup %326  ;;  %v96_v62 = vadd.f32 1e-06, %v94_v59 }
 0x112   :  { %v98_v63 = vmul.f32 %v327_v61, %v95_v52  ;;  %vm103_vm7 = vweird.f32 %v327_v61 }
 0x113   :  { %328 = vrcp.f32 %v96_v62  ;;  %vm104_vm9 = vmor %vm102_vm8, %vm103_vm7  ;;  %v123_v11 = vand.u32 2147483648, %v96_v62  ;;  %v121_v13 = vand.u32 2147483647, %v96_v62  ;;  %vm117_vm12 = vweird.f32 %v96_v62 }
 0x114   :  { %v99_v0 = vsub.f32 1.0, %v98_v63 }
 0x115   :  { %v124_v17 = vor.u32 1.1754944e-38, %v123_v11  ;;  %vm122_vm14 = vcmp.eq.f32.partialorder %v121_v13, 8.507059e+37 }
 0x116   :  { %v100_v2 = vmul.f32 %v327_v61, %v99_v0 }
 0x118   :  { %v101_v3 = vadd.f32 %v327_v61, %v100_v2 }
 0x119   :  { %v329_v4 = vpop.eup %328 }
 0x11a   :  { %v113_v7 = vmul.f32 %v329_v4, %v96_v62  ;;  %v105_v8 = vsel %vm104_vm9, %v327_v61, %v101_v3  ;;  %vm118_vm11 = vweird.f32 %v329_v4 }
 0x11b   :  { %v110_v14 = vsel %vm107_vm10, %v109_v10, %v105_v8  ;;  %vm119_vm13 = vmor %vm117_vm12, %vm118_vm11 }
 0x11c   :  { %v114_v9 = vsub.f32 1.0, %v113_v7  ;;  %v111_v18 = vmul.f32 %v110_v14, %v383_v15  ;;  %v306_v15 = vld [vmem:[%s442_s5 + $0x10] sm:$0xff] }
 0x11d   :  { %246 = vmatpush.bf16.msra.mxu1 %v306_v15 }
 0x11e   :  { %v115_v12 = vmul.f32 %v329_v4, %v114_v9  ;;  %v130_v24 = vadd.f32 %v315_v20, %v111_v18 }
 0x120   :  { %v116_v16 = vadd.f32 %v329_v4, %v115_v12 }
 0x121   :  { %247 = vmatpush.bf16.msra.mxu1 %v305_v28 }
 0x122   :  { %v120_v19 = vsel %vm119_vm13, %v329_v4, %v116_v16 }
 0x123   :  { %v125_v22 = vsel %vm122_vm14, %v124_v17, %v120_v19 }
 0x124   :  { %v126_v23 = vmul.f32 %v125_v22, %v386_v21  ;;  %v304_v21 = vld [vmem:[%s442_s5] sm:$0xff] }
 0x125   :  { %248 = vmatpush.bf16.msra.mxu1 %v304_v21 }
 0x126   :  { %v131_v25 = vadd.f32 %v315_v20, %v126_v23 }
 0x128   :  { %v132_v26 = vpack.c.bf16 %v131_v25, %v130_v24 }
 0x12a   :  { %269 = vmatmul.msk.bf16.vlgmr.msra.gmra.mxu0 %vm31_vm0, %v132_v26 }
 0x1a7   :  { %v165_v29 = vpop.f32.mrf.mxu0 }
 0x1a8   :  { %v166_v31 = vadd.f32 %v316_v30, %v165_v29 }
 0x1aa   :  { %v170_v34 = vmax.f32 %v166_v31, 0.0 }
 0x1af   :  { %v167_v32 = vpop.f32.mrf.mxu0 }
 0x1b0   :  { %v168_v33 = vadd.f32 %v316_v30, %v167_v32 }
 0x1b2   :  { %v171_v35 = vmax.f32 %v168_v33, 0.0 }
 0x1b4   :  { %v172_v36 = vpack.c.bf16 %v171_v35, %v170_v34 }
 0x1b6   :  { %249 = vmatmul.bf16.vlgmr.msra.gmra.mxu1 %v172_v36 }
 0x233   :  { %v250_v38 = vpop.f32.mrf.mxu1 }
 0x234   :  { %v251_v39 = vadd.f32 %v317_v37, %v250_v38 }
 0x236   :  { %255 = vst [vmem:[%s444_s7] sm:$0xff] %v251_v39 }
 0x23b   :  { %v252_v40 = vpop.f32.mrf.mxu1 }
 0x23c   :  { %v253_v41 = vadd.f32 %v317_v37, %v252_v40 }
 0x23e   :  { %256 = vst [vmem:[%s444_s7 + $0x8] sm:$0xff] %v253_v41 }

// kernel: te_forward.11
= control target key start
LH: loop header
LB: loop body
LE: loop exit
PB: predicated region body
PF: predicated region fallthrough
CT: control target
= control target key end

     0   :  { %vm31_vm0 = vcmask 261120   ;;  %v285_v4 = vmov 32.0   ;;  %v286_v24 = vmov 31.0   ;;  %vm209_vm15 = vcmask 523264   ;;  %s392_s0 = inlined_call_operand.vmem [shape: f32[16,32], index: 0, kind: input, shape index: {}, may-alias: {0,7}]   ;;  %s393_s1 = inlined_call_operand.vmem [shape: f32[1,32], index: 1, kind: input, shape index: {}]   ;;  %s394_s2 = inlined_call_operand.vmem [shape: f32[1,32], index: 2, kind: input, shape index: {}]   ;;  %s395_s4 = inlined_call_operand.vmem [shape: f32[1,64], index: 4, kind: input, shape index: {}]   ;;  %s396_s3 = inlined_call_operand.vmem [shape: bf16[32,64], index: 3, kind: input, shape index: {}]   ;;  %s397_s6 = inlined_call_operand.vmem [shape: f32[1,32], index: 6, kind: input, shape index: {}]   ;;  %s398_s5 = inlined_call_operand.vmem [shape: bf16[64,32], index: 5, kind: input, shape index: {}]   ;;  %s399_s7 = inlined_call_operand.vmem [shape: f32[16,32], index: 7, kind: output, shape index: {}, may-alias: {0,7}]  }
   0x1   :  { %v330_v0 = vld [vmem:[%s392_s0] sm:$0xff]  ;;  %v337_v2 = vld [vmem:[%s392_s0 + $0x8] sm:$0xff]  ;;  %273 = vrcp.f32 %v285_v4 }
   0x2   :  { %v32_v1 = vsel %vm31_vm0, %v330_v0, 0.0  ;;  %v35_v3 = vsel %vm31_vm0, %v337_v2, 0.0  ;;  %v269_v12 = vld [vmem:[%s393_s1] ss:$0 sm:$0xff]  ;;  %275 = vrcp.f32 %v286_v24  ;;  %v262_v31 = vld [vmem:[%s396_s3 + $0x8] sm:$0xff] }
   0x3   :  { %33 = vadd.xlane.f32.xlu0 %v32_v1  ;;  %162 = vmatpush.bf16.msra.mxu0 %v262_v31  ;;  %v261_v33 = vld [vmem:[%s396_s3] sm:$0xff] }
   0x7   :  { %v274_v5 = vpop.eup %273  ;;  %163 = vmatpush.bf16.msra.mxu0 %v261_v33 }
   0x8   :  { %v39_v6 = vmul.f32 32.0, %v274_v5  ;;  %vm43_vm1 = vweird.f32 %v274_v5  ;;  %v276_v25 = vpop.eup %275 }
   0x9   :  { %v58_v26 = vmul.f32 31.0, %v276_v25  ;;  %vm62_vm2 = vweird.f32 %v276_v25 }
   0xa   :  { %v40_v7 = vsub.f32 1.0, %v39_v6 }
   0xb   :  { %36 = vadd.xlane.f32.xlu0 %v35_v3  ;;  %v59_v27 = vsub.f32 1.0, %v58_v26  ;;  %v264_v26 = vld [vmem:[%s398_s5 + $0x8] sm:$0xff] }
   0xc   :  { %v41_v8 = vmul.f32 %v274_v5, %v40_v7 }
   0xd   :  { %v60_v28 = vmul.f32 %v276_v25, %v59_v27 }
   0xe   :  { %v42_v9 = vadd.f32 %v274_v5, %v41_v8 }
   0xf   :  { %v61_v29 = vadd.f32 %v276_v25, %v60_v28  ;;  %v271_v28 = vld [vmem:[%s395_s4] ss:$0 sm:$0xff] }
  0x10   :  { %v44_v10 = vsel %vm43_vm1, %v274_v5, %v42_v9 }
  0x11   :  { %v63_v30 = vsel %vm62_vm2, %v276_v25, %v61_v29  ;;  %v266_v25 = vld [vmem:[%s398_s5 + $0x18] sm:$0xff] }
  0x12   :  { %217 = vmatpush.bf16.msra.mxu1 %v266_v25 }
  0x76   :  { %v34_v11 = vpop.xlane.xlu0 %33 }
  0x77   :  { %v45_v13 = vmul.f32 %v44_v10, %v34_v11 }
  0x79   :  { %v47_v14 = vsub.f32 %v330_v0, %v45_v13 }
  0x7b   :  { %v345_v15 = vmul.f32 %v269_v12, %v47_v14  ;;  %v49_v16 = vmul.f32 %v47_v14, %v47_v14 }
  0x7d   :  { %v51_v17 = vsel %vm31_vm0, %v49_v16, 0.0 }
  0x7e   :  { %52 = vadd.xlane.f32.xlu1 %v51_v17  ;;  %v37_v18 = vpop.xlane.xlu0 %36 }
  0x7f   :  { %v46_v19 = vmul.f32 %v44_v10, %v37_v18  ;;  %v270_v18 = vld [vmem:[%s394_s2] ss:$0 sm:$0xff] }
  0x81   :  { %v48_v20 = vsub.f32 %v337_v2, %v46_v19 }
  0x83   :  { %v349_v21 = vmul.f32 %v269_v12, %v48_v20  ;;  %v50_v22 = vmul.f32 %v48_v20, %v48_v20 }
  0x85   :  { %v54_v23 = vsel %vm31_vm0, %v50_v22, 0.0 }
  0x86   :  { %55 = vadd.xlane.f32.xlu1 %v54_v23 }
  0xf1   :  { %v53_v32 = vpop.xlane.xlu1 %52 }
  0xf2   :  { %v64_v34 = vmul.f32 %v63_v30, %v53_v32 }
  0xf4   :  { %277 = vrsqrt.f32 %v64_v34  ;;  %vm78_vm3 = vcmp.eq.f32.partialorder %v64_v34, inf  ;;  %v81_v47 = vand.u32 2147483648, %v64_v34  ;;  %vm80_vm4 = vcmp.eq.f32.partialorder %v64_v34, 0.0 }
  0xf9   :  { %v56_v35 = vpop.xlane.xlu1 %55 }
  0xfa   :  { %v278_v36 = vpop.eup %277  ;;  %v65_v37 = vmul.f32 %v63_v30, %v56_v35  ;;  %v272_v35 = vld [vmem:[%s397_s6] ss:$0 sm:$0xff] }
  0xfb   :  { %v72_v38 = vmul.f32 %v278_v36, %v64_v34 }
  0xfc   :  { %279 = vrsqrt.f32 %v65_v37  ;;  %vm90_vm5 = vcmp.eq.f32.partialorder %v65_v37, inf  ;;  %v93_v55 = vand.u32 2147483648, %v65_v37  ;;  %vm92_vm6 = vcmp.eq.f32.partialorder %v65_v37, 0.0 }
  0xfd   :  { %v73_v39 = vmul.f32 %v278_v36, %v72_v38 }
  0xff   :  { %v74_v40 = vmul.f32 0.5, %v73_v39 }
 0x101   :  { %v75_v41 = vsub.f32 1.5, %v74_v40 }
 0x102   :  { %v280_v42 = vpop.eup %279 }
 0x103   :  { %v76_v43 = vmul.f32 %v278_v36, %v75_v41  ;;  %v84_v44 = vmul.f32 %v280_v42, %v65_v37 }
 0x105   :  { %v77_v45 = vmul.f32 %v76_v43, %v64_v34  ;;  %v85_v46 = vmul.f32 %v280_v42, %v84_v44 }
 0x107   :  { %v79_v48 = vsel %vm78_vm3, %v64_v34, %v77_v45  ;;  %v86_v49 = vmul.f32 0.5, %v85_v46 }
 0x108   :  { %v82_v50 = vsel %vm80_vm4, %v81_v47, %v79_v48 }
 0x109   :  { %v87_v51 = vsub.f32 1.5, %v86_v49  ;;  %v95_v52 = vadd.f32 1e-06, %v82_v50 }
 0x10b   :  { %v88_v53 = vmul.f32 %v280_v42, %v87_v51  ;;  %281 = vrcp.f32 %v95_v52  ;;  %v108_v3 = vand.u32 2147483648, %v95_v52  ;;  %vm102_vm8 = vweird.f32 %v95_v52 }
 0x10c   :  { %v106_v4 = vand.u32 2147483647, %v95_v52 }
 0x10d   :  { %v89_v54 = vmul.f32 %v88_v53, %v65_v37  ;;  %v109_v8 = vor.u32 1.1754944e-38, %v108_v3 }
 0x10e   :  { %vm107_vm10 = vcmp.eq.f32.partialorder %v106_v4, 8.507059e+37 }
 0x10f   :  { %v91_v56 = vsel %vm90_vm5, %v65_v37, %v89_v54 }
 0x110   :  { %v94_v57 = vsel %vm92_vm6, %v93_v55, %v91_v56 }
 0x111   :  { %v282_v58 = vpop.eup %281  ;;  %v96_v59 = vadd.f32 1e-06, %v94_v57 }
 0x112   :  { %v98_v60 = vmul.f32 %v282_v58, %v95_v52  ;;  %vm103_vm7 = vweird.f32 %v282_v58 }
 0x113   :  { %283 = vrcp.f32 %v96_v59  ;;  %vm104_vm9 = vmor %vm102_vm8, %vm103_vm7  ;;  %v123_v9 = vand.u32 2147483648, %v96_v59  ;;  %v121_v11 = vand.u32 2147483647, %v96_v59  ;;  %vm117_vm12 = vweird.f32 %v96_v59 }
 0x114   :  { %v99_v61 = vsub.f32 1.0, %v98_v60 }
 0x115   :  { %v124_v14 = vor.u32 1.1754944e-38, %v123_v9  ;;  %vm122_vm14 = vcmp.eq.f32.partialorder %v121_v11, 8.507059e+37 }
 0x116   :  { %v100_v62 = vmul.f32 %v282_v58, %v99_v61 }
 0x118   :  { %v101_v63 = vadd.f32 %v282_v58, %v100_v62 }
 0x119   :  { %v284_v1 = vpop.eup %283 }
 0x11a   :  { %v113_v5 = vmul.f32 %v284_v1, %v96_v59  ;;  %v105_v6 = vsel %vm104_vm9, %v282_v58, %v101_v63  ;;  %vm118_vm11 = vweird.f32 %v284_v1 }
 0x11b   :  { %v110_v12 = vsel %vm107_vm10, %v109_v8, %v105_v6  ;;  %vm119_vm13 = vmor %vm117_vm12, %vm118_vm11 }
 0x11c   :  { %v114_v7 = vsub.f32 1.0, %v113_v5  ;;  %v111_v16 = vmul.f32 %v110_v12, %v345_v15  ;;  %v265_v15 = vld [vmem:[%s398_s5 + $0x10] sm:$0xff] }
 0x11d   :  { %218 = vmatpush.bf16.msra.mxu1 %v265_v15 }
 0x11e   :  { %v115_v10 = vmul.f32 %v284_v1, %v114_v7  ;;  %v130_v22 = vadd.f32 %v270_v18, %v111_v16 }
 0x120   :  { %v116_v13 = vadd.f32 %v284_v1, %v115_v10 }
 0x121   :  { %219 = vmatpush.bf16.msra.mxu1 %v264_v26 }
 0x122   :  { %v120_v17 = vsel %vm119_vm13, %v284_v1, %v116_v13 }
 0x123   :  { %v125_v19 = vsel %vm122_vm14, %v124_v14, %v120_v17 }
 0x124   :  { %v126_v20 = vmul.f32 %v125_v19, %v349_v21  ;;  %v263_v21 = vld [vmem:[%s398_s5] sm:$0xff] }
 0x125   :  { %220 = vmatpush.bf16.msra.mxu1 %v263_v21 }
 0x126   :  { %v131_v23 = vadd.f32 %v270_v18, %v126_v20 }
 0x128   :  { %v132_v24 = vpack.c.bf16 %v131_v23, %v130_v22 }
 0x12a   :  { %243 = vmatmul.msk.bf16.vlgmr.msra.gmra.mxu0 %vm31_vm0, %v132_v24 }
 0x1a7   :  { %v165_v27 = vpop.f32.mrf.mxu0 }
 0x1a8   :  { %v166_v29 = vadd.f32 %v271_v28, %v165_v27 }
 0x1aa   :  { %v170_v32 = vmax.f32 %v166_v29, 0.0 }
 0x1af   :  { %v167_v30 = vpop.f32.mrf.mxu0 }
 0x1b0   :  { %v168_v31 = vadd.f32 %v271_v28, %v167_v30 }
 0x1b2   :  { %v171_v33 = vmax.f32 %v168_v31, 0.0 }
 0x1b4   :  { %v172_v34 = vpack.c.bf16 %v171_v33, %v170_v32 }
 0x1b6   :  { %260 = vmatmul.msk.bf16.vlgmr.msra.gmra.mxu1 %vm209_vm15, %v172_v34 }
 0x233   :  { %v222_v36 = vpop.f32.mrf.mxu1 }
 0x234   :  { %v223_v37 = vadd.f32 %v272_v35, %v222_v36 }
 0x236   :  { %v227_v38 = vadd.f32 %v223_v37, %v330_v0 }
 0x238   :  { %229 = vst.msk [vmem:[%s399_s7] sm:$0xff] %vm31_vm0, %v227_v38 }
 0x23b   :  { %v224_v39 = vpop.f32.mrf.mxu1 }
 0x23c   :  { %v225_v40 = vadd.f32 %v272_v35, %v224_v39 }
 0x23e   :  { %v228_v41 = vadd.f32 %v225_v40, %v337_v2 }
 0x240   :  { %230 = vst.msk [vmem:[%s399_s7 + $0x8] sm:$0xff] %vm31_vm0, %v228_v41 }

</bundles_post_ra>
